<compile_context>
chip_gen: v6e
topology: v6e:2x2x1
jax: 0.10.0
libtpu: 0.0.40
codegen_flags: <defaults>
</compile_context>

<pallas_src>
import functools

import jax
import jax.numpy as jnp
from jax.experimental import pallas as pl
from jax.experimental.pallas import tpu as pltpu


def _round_up(v, m):
    return ((v + m - 1) // m) * m


def _fused_conv_relu_pool_kernel(*refs, filter_sizes, cout_pad, pooling):
    """Fused ConvSemSim forward for one batch tile.

    refs = (x_ref, w_ref_0, ..., w_ref_{n-1}, b_ref, o_ref)
      x_ref : (TB, maxlen, D)        VMEM  f32
      w_ref : (K_i * D, Co)          VMEM  bf16   (im2col-reshaped weights)
      b_ref : (n_branches, Co)       VMEM  f32
      o_ref : (TB, cout_pad)         VMEM  f32    (lane-dense, >= n*Co)
    """
    n = len(filter_sizes)
    x_ref = refs[0]
    w_refs = refs[1:1 + n]
    b_ref = refs[1 + n]
    o_ref = refs[-1]

    # Read the activation tile once; round to bf16 for the MXU (f32 acc below).
    x = x_ref[...].astype(jnp.bfloat16)          # (TB, maxlen, D)
    tb, maxlen, _ = x.shape

    parts = []
    for i, K in enumerate(filter_sizes):         # tiny static loop -> unrolled
        L = maxlen - K + 1
        # im2col: lane-concatenate the K shifted views -> contraction depth K*D
        lhs = jnp.concatenate([x[:, k:k + L, :] for k in range(K)], axis=-1)
        rhs = w_refs[i][...]                     # (K*D, Co) bf16
        co = rhs.shape[1]
        acc = jax.lax.dot_general(               # (TB, L, Co), f32 accumulation
            lhs, rhs,
            dimension_numbers=(((2,), (0,)), ((), ())),
            preferred_element_type=jnp.float32)
        b = b_ref[i, :]                          # (Co,) f32
        if pooling == "max":                     # F.max_pool1d(i, i.size(2))
            # max_l relu(z_l + b) == relu(max_l z_l + b)  (monotone ops), so the
            # bias/ReLU run on (TB, Co) instead of (TB, L, Co).
            parts.append(jnp.maximum(jnp.max(acc, axis=1) + b[None, :], 0.0))
        else:                                    # F.avg_pool1d(i, i.size(2))
            act = jnp.maximum(acc + b.reshape(1, 1, co), 0.0)
            parts.append(jnp.mean(act, axis=1))

    used = sum(p.shape[1] for p in parts)
    if cout_pad > used:                          # zero-pad to a 128-lane multiple
        parts.append(jnp.zeros((tb, cout_pad - used), jnp.float32))
    # Single unmasked, lane-dense store of the concatenated branch outputs.
    o_ref[...] = jnp.concatenate(parts, axis=1).astype(o_ref.dtype)


def conv_sem_sim_forward(x, weights, biases, pooling="max", batch_tile=None):
    """x: (nb, maxlen, D) f32. weights[i]: (K_i, D, Co). biases[i]: (Co,)."""
    nb, maxlen, D = x.shape
    Ks = tuple(int(w.shape[0]) for w in weights)
    Co = int(weights[0].shape[2])
    co_total = Co * len(Ks)
    cout_pad = _round_up(co_total, 128)          # lane-dense output block

    # Weights / biases are tiny and resident: reshape to im2col layout, bf16.
    w_bf = [w.reshape(w.shape[0] * D, Co).astype(jnp.bfloat16) for w in weights]
    b_all = jnp.stack([b.astype(jnp.float32) for b in biases], axis=0)  # (n, Co)

    # Batch tile: biggest tile whose working set (double-buffered f32 x tile +
    # largest im2col lhs + largest f32 accumulator + double-buffered output
    # block) stays well inside the scoped VMEM limit on every generation.
    if batch_tile is None:
        mlp, dp = _round_up(maxlen, 8), _round_up(D, 128)
        l_max = _round_up(maxlen - min(Ks) + 1, 16)
        per_row = (2 * mlp * dp * 4                              # x tile (f32, 2 bufs)
                   + l_max * _round_up(max(Ks) * D, 128) * 2     # largest im2col lhs (bf16)
                   + l_max * _round_up(Co, 128) * 4              # largest accumulator (f32)
                   + 2 * cout_pad * 4)                           # output block (f32, 2 bufs)
        cap = (12 << 20) // max(per_row, 1)
        cap = max(8, min(512, cap // 8 * 8, _round_up(nb, 8)))
        # Prefer a tile that divides nb: keeps the wrapper copy-free (no pad).
        batch_tile = next((t for t in range(cap, 7, -8) if nb % t == 0), cap)
    TB = batch_tile

    nb_pad = _round_up(nb, TB)
    if nb_pad != nb:                             # zero rows are inert, sliced off below
        x = jnp.pad(x, ((0, nb_pad - nb), (0, 0), (0, 0)))

    grid = (nb_pad // TB,)
    kern = functools.partial(
        _fused_conv_relu_pool_kernel,
        filter_sizes=Ks, cout_pad=cout_pad, pooling=pooling)

    flops = sum(2 * nb_pad * (maxlen - K + 1) * K * D * Co for K in Ks)
    bytes_accessed = (x.size * 4 + sum(w.size * 2 for w in w_bf)
                      + b_all.size * 4 + nb_pad * cout_pad * 4)

    in_specs = [pl.BlockSpec((TB, maxlen, D), lambda b: (b, 0, 0))]
    in_specs += [pl.BlockSpec(w.shape, lambda b: (0, 0)) for w in w_bf]  # resident
    in_specs += [pl.BlockSpec(b_all.shape, lambda b: (0, 0))]            # resident

    out = pl.pallas_call(
        kern,
        out_shape=jax.ShapeDtypeStruct((nb_pad, cout_pad), jnp.float32),
        grid=grid,
        in_specs=in_specs,
        out_specs=pl.BlockSpec((TB, cout_pad), lambda b: (b, 0)),
        compiler_params=pltpu.CompilerParams(
            dimension_semantics=("parallel",),
            vmem_limit_bytes=32 * 1024 * 1024),
        cost_estimate=pl.CostEstimate(
            flops=flops, transcendentals=0, bytes_accessed=bytes_accessed),
    )(x, *w_bf, b_all)

    return out[:nb, :co_total]


def _reference(x, weights, biases, pooling="max"):
    """Pure-jnp f32 reference mirroring the PyTorch forward."""
    outs = []
    for w, b in zip(weights, biases):
        K, D, Co = w.shape
        L = x.shape[1] - K + 1
        pre = sum(
            jnp.einsum("bld,dc->blc", x[:, k:k + L, :], w[k]) for k in range(K)
        ) + b[None, None, :]
        act = jnp.maximum(pre, 0.0)
        outs.append(jnp.max(act, axis=1) if pooling == "max" else jnp.mean(act, axis=1))
    return jnp.concatenate(outs, axis=1)


def make_params(key, embed_dim, filter_num, filter_sizes):
    """Deterministic parameter init (xavier-normal weights, uniform bias)."""
    weights, biases = [], []
    for K in filter_sizes:
        key, kw, kb = jax.random.split(key, 3)
        fan_in = 1 * K * embed_dim
        fan_out = filter_num * K * embed_dim
        std = (2.0 / (fan_in + fan_out)) ** 0.5
        w = std * jax.random.normal(kw, (K, embed_dim, filter_num), jnp.float32)
        bound = 1.0 / (fan_in ** 0.5)
        b = jax.random.uniform(kb, (filter_num,), jnp.float32, -bound, bound)
        weights.append(w)
        biases.append(b)
    return weights, biases


if __name__ == "__main__":
    # Small shapes consistent with the module: batch=2, maxlen=16, embed=32,
    # filter_num=8, filter_sizes=(3, 4, 5).
    nb, maxlen, embed_dim = 2, 16, 32
    filter_num = 8
    filter_sizes = (3, 4, 5)

    key = jax.random.PRNGKey(0)
    key, kx = jax.random.split(key)
    x = jax.random.normal(kx, (nb, maxlen, embed_dim), jnp.float32)
    weights, biases = make_params(key, embed_dim, filter_num, filter_sizes)

    for pooling in ("max", "avg"):
        out = conv_sem_sim_forward(x, weights, biases, pooling)
        out = jax.block_until_ready(out)
        ref = _reference(x, weights, biases, pooling)
        assert out.shape == (nb, filter_num * len(filter_sizes))
        # bf16 matmul inputs + f32 accumulation vs pure-f32 reference -> loose tolerance.
        assert jnp.allclose(out, ref, atol=5e-2, rtol=5e-2), f"mismatch ({pooling})"

    print("KERNEL_OK")
</pallas_src>

<mosaic_0001>
module attributes {stable_mosaic.version = 11 : i64} {
  func.func @_fused_conv_relu_pool_kernel(%arg0: i32, %arg1: memref<8x16x32xf32, #tpu.memory_space<vmem>>, %arg2: memref<96x8xbf16, #tpu.memory_space<vmem>>, %arg3: memref<128x8xbf16, #tpu.memory_space<vmem>>, %arg4: memref<160x8xbf16, #tpu.memory_space<vmem>>, %arg5: memref<3x8xf32, #tpu.memory_space<vmem>>, %arg6: memref<8x128xf32, #tpu.memory_space<vmem>>) attributes {dimension_semantics = [#tpu.dimension_semantics<parallel>], iteration_bounds = array<i64: 1>, scalar_prefetch = 0 : i64, scratch_operands = 0 : i64, tpu.core_type = #tpu.core_type<tc>, window_params = [{transform_indices = @transform_0, window_bounds = array<i64: 8, 16, 32>}, {pipeline_mode = #tpu.pipeline_mode<synchronous>, transform_indices = @transform_1, window_bounds = array<i64: 96, 8>}, {pipeline_mode = #tpu.pipeline_mode<synchronous>, transform_indices = @transform_2, window_bounds = array<i64: 128, 8>}, {pipeline_mode = #tpu.pipeline_mode<synchronous>, transform_indices = @transform_3, window_bounds = array<i64: 160, 8>}, {pipeline_mode = #tpu.pipeline_mode<synchronous>, transform_indices = @transform_4, window_bounds = array<i64: 3, 8>}, {transform_indices = @transform_5, window_bounds = array<i64: 8, 128>}]} {
    %c0 = arith.constant 0 : index
    %c0_0 = arith.constant 0 : index
    %c0_1 = arith.constant 0 : index
    %0 = vector.load %arg1[%c0, %c0_0, %c0_1] : memref<8x16x32xf32, #tpu.memory_space<vmem>>, vector<8x16x32xf32>
    %1 = arith.truncf %0 : vector<8x16x32xf32> to vector<8x16x32xbf16>
    %2 = vector.extract_strided_slice %1 {offsets = [0, 0, 0], sizes = [8, 14, 32], strides = [1, 1, 1]} : vector<8x16x32xbf16> to vector<8x14x32xbf16>
    %3 = vector.extract_strided_slice %1 {offsets = [0, 1, 0], sizes = [8, 14, 32], strides = [1, 1, 1]} : vector<8x16x32xbf16> to vector<8x14x32xbf16>
    %4 = vector.extract_strided_slice %1 {offsets = [0, 2, 0], sizes = [8, 14, 32], strides = [1, 1, 1]} : vector<8x16x32xbf16> to vector<8x14x32xbf16>
    %5 = tpu.concatenate %2, %3, %4 in 2 : vector<8x14x32xbf16>, vector<8x14x32xbf16>, vector<8x14x32xbf16> -> vector<8x14x96xbf16>
    %c0_2 = arith.constant 0 : index
    %c0_3 = arith.constant 0 : index
    %6 = vector.load %arg2[%c0_2, %c0_3] : memref<96x8xbf16, #tpu.memory_space<vmem>>, vector<96x8xbf16>
    %cst = arith.constant dense<0.000000e+00> : vector<8x14x8xf32>
    %7 = tpu.matmul %5, %6, %cst {dimension_numbers = #tpu.dot_dimension_numbers<[2], [0], [0, 1], [1], [0, 0, 0, 1, 1, 1], [], []>} : vector<8x14x96xbf16>, vector<96x8xbf16>, vector<8x14x8xf32> -> vector<8x14x8xf32>
    %c0_4 = arith.constant 0 : index
    %c0_5 = arith.constant 0 : index
    %8 = vector.load %arg5[%c0_4, %c0_5] : memref<3x8xf32, #tpu.memory_space<vmem>>, vector<1x8xf32>
    %9 = vector.shape_cast %8 : vector<1x8xf32> to vector<8xf32>
    %cst_6 = arith.constant dense<0xFF800000> : vector<8x8xf32>
    %10 = vector.multi_reduction <maximumf>, %7, %cst_6 [1] : vector<8x14x8xf32> to vector<8x8xf32>
    %11 = vector.shape_cast %9 : vector<8xf32> to vector<1x8xf32>
    %12 = vector.broadcast %11 : vector<1x8xf32> to vector<8x8xf32>
    %13 = arith.addf %10, %12 : vector<8x8xf32>
    %cst_7 = arith.constant 0.000000e+00 : f32
    %14 = vector.broadcast %cst_7 : f32 to vector<8x8xf32>
    %15 = arith.maximumf %13, %14 : vector<8x8xf32>
    %16 = vector.extract_strided_slice %1 {offsets = [0, 0, 0], sizes = [8, 13, 32], strides = [1, 1, 1]} : vector<8x16x32xbf16> to vector<8x13x32xbf16>
    %17 = vector.extract_strided_slice %1 {offsets = [0, 1, 0], sizes = [8, 13, 32], strides = [1, 1, 1]} : vector<8x16x32xbf16> to vector<8x13x32xbf16>
    %18 = vector.extract_strided_slice %1 {offsets = [0, 2, 0], sizes = [8, 13, 32], strides = [1, 1, 1]} : vector<8x16x32xbf16> to vector<8x13x32xbf16>
    %19 = vector.extract_strided_slice %1 {offsets = [0, 3, 0], sizes = [8, 13, 32], strides = [1, 1, 1]} : vector<8x16x32xbf16> to vector<8x13x32xbf16>
    %20 = tpu.concatenate %16, %17, %18, %19 in 2 : vector<8x13x32xbf16>, vector<8x13x32xbf16>, vector<8x13x32xbf16>, vector<8x13x32xbf16> -> vector<8x13x128xbf16>
    %c0_8 = arith.constant 0 : index
    %c0_9 = arith.constant 0 : index
    %21 = vector.load %arg3[%c0_8, %c0_9] : memref<128x8xbf16, #tpu.memory_space<vmem>>, vector<128x8xbf16>
    %cst_10 = arith.constant dense<0.000000e+00> : vector<8x13x8xf32>
    %22 = tpu.matmul %20, %21, %cst_10 {dimension_numbers = #tpu.dot_dimension_numbers<[2], [0], [0, 1], [1], [0, 0, 0, 1, 1, 1], [], []>} : vector<8x13x128xbf16>, vector<128x8xbf16>, vector<8x13x8xf32> -> vector<8x13x8xf32>
    %c1 = arith.constant 1 : index
    %c0_11 = arith.constant 0 : index
    %23 = vector.load %arg5[%c1, %c0_11] : memref<3x8xf32, #tpu.memory_space<vmem>>, vector<1x8xf32>
    %24 = vector.shape_cast %23 : vector<1x8xf32> to vector<8xf32>
    %cst_12 = arith.constant dense<0xFF800000> : vector<8x8xf32>
    %25 = vector.multi_reduction <maximumf>, %22, %cst_12 [1] : vector<8x13x8xf32> to vector<8x8xf32>
    %26 = vector.shape_cast %24 : vector<8xf32> to vector<1x8xf32>
    %27 = vector.broadcast %26 : vector<1x8xf32> to vector<8x8xf32>
    %28 = arith.addf %25, %27 : vector<8x8xf32>
    %cst_13 = arith.constant 0.000000e+00 : f32
    %29 = vector.broadcast %cst_13 : f32 to vector<8x8xf32>
    %30 = arith.maximumf %28, %29 : vector<8x8xf32>
    %31 = vector.extract_strided_slice %1 {offsets = [0, 0, 0], sizes = [8, 12, 32], strides = [1, 1, 1]} : vector<8x16x32xbf16> to vector<8x12x32xbf16>
    %32 = vector.extract_strided_slice %1 {offsets = [0, 1, 0], sizes = [8, 12, 32], strides = [1, 1, 1]} : vector<8x16x32xbf16> to vector<8x12x32xbf16>
    %33 = vector.extract_strided_slice %1 {offsets = [0, 2, 0], sizes = [8, 12, 32], strides = [1, 1, 1]} : vector<8x16x32xbf16> to vector<8x12x32xbf16>
    %34 = vector.extract_strided_slice %1 {offsets = [0, 3, 0], sizes = [8, 12, 32], strides = [1, 1, 1]} : vector<8x16x32xbf16> to vector<8x12x32xbf16>
    %35 = vector.extract_strided_slice %1 {offsets = [0, 4, 0], sizes = [8, 12, 32], strides = [1, 1, 1]} : vector<8x16x32xbf16> to vector<8x12x32xbf16>
    %36 = tpu.concatenate %31, %32, %33, %34, %35 in 2 : vector<8x12x32xbf16>, vector<8x12x32xbf16>, vector<8x12x32xbf16>, vector<8x12x32xbf16>, vector<8x12x32xbf16> -> vector<8x12x160xbf16>
    %c0_14 = arith.constant 0 : index
    %c0_15 = arith.constant 0 : index
    %37 = vector.load %arg4[%c0_14, %c0_15] : memref<160x8xbf16, #tpu.memory_space<vmem>>, vector<160x8xbf16>
    %cst_16 = arith.constant dense<0.000000e+00> : vector<8x12x8xf32>
    %38 = tpu.matmul %36, %37, %cst_16 {dimension_numbers = #tpu.dot_dimension_numbers<[2], [0], [0, 1], [1], [0, 0, 0, 1, 1, 1], [], []>} : vector<8x12x160xbf16>, vector<160x8xbf16>, vector<8x12x8xf32> -> vector<8x12x8xf32>
    %c2 = arith.constant 2 : index
    %c0_17 = arith.constant 0 : index
    %39 = vector.load %arg5[%c2, %c0_17] : memref<3x8xf32, #tpu.memory_space<vmem>>, vector<1x8xf32>
    %40 = vector.shape_cast %39 : vector<1x8xf32> to vector<8xf32>
    %cst_18 = arith.constant dense<0xFF800000> : vector<8x8xf32>
    %41 = vector.multi_reduction <maximumf>, %38, %cst_18 [1] : vector<8x12x8xf32> to vector<8x8xf32>
    %42 = vector.shape_cast %40 : vector<8xf32> to vector<1x8xf32>
    %43 = vector.broadcast %42 : vector<1x8xf32> to vector<8x8xf32>
    %44 = arith.addf %41, %43 : vector<8x8xf32>
    %cst_19 = arith.constant 0.000000e+00 : f32
    %45 = vector.broadcast %cst_19 : f32 to vector<8x8xf32>
    %46 = arith.maximumf %44, %45 : vector<8x8xf32>
    %cst_20 = arith.constant 0.000000e+00 : f32
    %47 = vector.broadcast %cst_20 : f32 to vector<8x104xf32>
    %48 = tpu.concatenate %15, %30, %46, %47 in 1 : vector<8x8xf32>, vector<8x8xf32>, vector<8x8xf32>, vector<8x104xf32> -> vector<8x128xf32>
    %c0_21 = arith.constant 0 : index
    %c0_22 = arith.constant 0 : index
    %49 = vector.load %arg6[%c0_21, %c0_22] : memref<8x128xf32, #tpu.memory_space<vmem>>, vector<8x128xf32>
    tpu.vector_store %arg6[%c0_21, %c0_22], %48 {strides = array<i32>} : memref<8x128xf32, #tpu.memory_space<vmem>>, vector<8x128xf32>,
    return
  }
  func.func @transform_0(%arg0: i32) -> (i32, i32, i32) {
    %c0_i32 = arith.constant 0 : i32
    %c0_i32_0 = arith.constant 0 : i32
    %c0_i32_1 = arith.constant 0 : i32
    return %arg0, %c0_i32, %c0_i32_0 : i32, i32, i32
  }
  func.func @transform_1(%arg0: i32) -> (i32, i32) {
    %c0_i32 = arith.constant 0 : i32
    %c0_i32_0 = arith.constant 0 : i32
    %c0_i32_1 = arith.constant 0 : i32
    return %c0_i32, %c0_i32_0 : i32, i32
  }
  func.func @transform_2(%arg0: i32) -> (i32, i32) {
    %c0_i32 = arith.constant 0 : i32
    %c0_i32_0 = arith.constant 0 : i32
    %c0_i32_1 = arith.constant 0 : i32
    return %c0_i32, %c0_i32_0 : i32, i32
  }
  func.func @transform_3(%arg0: i32) -> (i32, i32) {
    %c0_i32 = arith.constant 0 : i32
    %c0_i32_0 = arith.constant 0 : i32
    %c0_i32_1 = arith.constant 0 : i32
    return %c0_i32, %c0_i32_0 : i32, i32
  }
  func.func @transform_4(%arg0: i32) -> (i32, i32) {
    %c0_i32 = arith.constant 0 : i32
    %c0_i32_0 = arith.constant 0 : i32
    %c0_i32_1 = arith.constant 0 : i32
    return %c0_i32, %c0_i32_0 : i32, i32
  }
  func.func @transform_5(%arg0: i32) -> (i32, i32) {
    %c0_i32 = arith.constant 0 : i32
    %c0_i32_0 = arith.constant 0 : i32
    return %arg0, %c0_i32 : i32, i32
  }
}

</mosaic_0001>

<bundles_post_ra>
// kernel: tpu_custom_call.1
= control target key start
LH: loop header
LB: loop body
LE: loop exit
PB: predicated region body
PF: predicated region fallthrough
CT: control target
= control target key end

     0   :  { %v6794_v7 = vmov 0.0   ;;  %s5194_s13 = smov 64   ;;  %s5195_s22 = smov 32   ;;  %vm5196_vm0 = vmmov 0   ;;  %s6788_s0 = inlined_call_operand.vmem [shape: f32[8,16,32], index: 0, kind: input, shape index: {}]   ;;  %s6789_s1 = inlined_call_operand.vmem [shape: bf16[96,8], index: 1, kind: input, shape index: {}]   ;;  %s6790_s2 = inlined_call_operand.vmem [shape: bf16[128,8], index: 2, kind: input, shape index: {}]   ;;  %s6791_s3 = inlined_call_operand.vmem [shape: bf16[160,8], index: 3, kind: input, shape index: {}]   ;;  %s6792_s4 = inlined_call_operand.vmem [shape: f32[3,8], index: 4, kind: input, shape index: {}]   ;;  %s6793_s5 = inlined_call_operand.hbm [shape: f32[8,128], index: 5, kind: output, shape index: {}]  }
   0x1   :  { %v32_v0 = vld [vmem:[%s6788_s0 + $0x50] sm:$0xff]  ;;  %v33_v1 = vld [vmem:[%s6788_s0 + $0x58] sm:$0xff]  ;;  %v34_v2 = vld [vmem:[%s6788_s0 + $0x60] sm:$0xff]  ;;  %5123 = vmatprep.subr.bf16.mxu1 %v6794_v7  ;;  %5039 = vmatprep.subr.bf16.mxu0 %v6794_v7 }
   0x2   :  { %v5243_v3 = vpack.c.bf16 %v33_v1, %v32_v0  ;;  %v35_v4 = vld [vmem:[%s6788_s0 + $0x68] sm:$0xff]  ;;  %v22_v5 = vld [vmem:[%s6788_s0] sm:$0xff]  ;;  %v24_v10 = vld [vmem:[%s6788_s0 + $0x10] sm:$0xff]  ;;  %5071 = vmatprep.mubr.msk.bf16.mxu1 %vm5196_vm0, %v6794_v7  ;;  %5051 = vmatprep.mubr.msk.bf16.mxu0 %vm5196_vm0, %v6794_v7 }
   0x3   :  { %v23_v6 = vld [vmem:[%s6788_s0 + $0x8] sm:$0xff]  ;;  %v5256_v8 = vpack.c.bf16 %v35_v4, %v34_v2  ;;  %v25_v11 = vld [vmem:[%s6788_s0 + $0x18] sm:$0xff]  ;;  %v36_v15 = vld [vmem:[%s6788_s0 + $0x70] sm:$0xff] }
   0x4   :  { %v5258_v9 = vpack.c.bf16 %v23_v6, %v22_v5  ;;  %v131_v12 = vrot.slane %v5243_v3, 1  ;;  %v82_v13 = vshrl.u32 %v5243_v3, 16  ;;  %v84_v14 = vshll.u32 %v5243_v3, 16  ;;  %v37_v16 = vld [vmem:[%s6788_s0 + $0x78] sm:$0xff]  ;;  %v26_v22 = vld [vmem:[%s6788_s0 + $0x20] sm:$0xff]  ;;  %v27_v26 = vld [vmem:[%s6788_s0 + $0x28] sm:$0xff] }
   0x5   :  { %6807 = vst [vmem:[#allocation5_spill] sm:$0xff] %v5256_v8  ;;  %v91_v17 = vshll.u32 %v5256_v8, 16  ;;  %v5276_v18 = vpack.c.bf16 %v25_v11, %v24_v10  ;;  %v132_v19 = vrot.slane %v5256_v8, 1  ;;  %v89_v21 = vshrl.u32 %v5256_v8, 16  ;;  %v5146_v27 = vld [vmem:[%s6789_s1 + $0x28] sm:$0xff]   ;;  %v5147_v32 = vld [vmem:[%s6789_s1 + $0x20] sm:$0xff]  }
   0x6   :  { %144 = vrot.lane.b32.xlu1 %v131_v12, %s5194_s13  ;;  %v86_v20 = vrot.slane %v84_v14, 1  ;;  %v49_v24 = vshll.u32 %v5258_v9, 16  ;;  %v5289_v25 = vpack.c.bf16 %v37_v16, %v36_v15  ;;  %v126_v29 = vrot.slane %v5258_v9, 1  ;;  %5129 = vmatpush3.bf16.msra.mxu1 %v5146_v27  ;;  %v5148_v40 = vld [vmem:[%s6789_s1 + $0x18] sm:$0xff]   ;;  %v28_v45 = vld [vmem:[%s6788_s0 + $0x30] sm:$0xff]  ;;  %v30_v58 = vld [vmem:[%s6788_s0 + $0x40] sm:$0xff] }
   0x7   :  { %v93_v23 = vrot.slane %v91_v17, 1  ;;  %v47_v30 = vshrl.u32 %v5258_v9, 16  ;;  %v56_v31 = vshll.u32 %v5276_v18, 16  ;;  %5040 = vmatpush3.bf16.msra.mxu0 %v5146_v27  ;;  %v5310_v36 = vpack.c.bf16 %v27_v26, %v26_v22  ;;  %5124 = vmatprep.subr.bf16.mxu1 %v6794_v7  ;;  %v29_v46 = vld [vmem:[%s6788_s0 + $0x38] sm:$0xff]  ;;  %v5149_v48 = vld [vmem:[%s6789_s1 + $0x10] sm:$0xff]   ;;  %v5150_v59 = vld [vmem:[%s6789_s1 + $0x8] sm:$0xff]  }
   0x8   :  { %6808 = vst [vmem:[#allocation6_spill] sm:$0xff] %v5289_v25  ;;  %v87_v28 = vor.u32 %v86_v20, %v82_v13  ;;  %v51_v34 = vrot.slane %v49_v24, 1  ;;  %v98_v35 = vshll.u32 %v5289_v25, 16  ;;  %5041 = vmatprep.subr.bf16.mxu0 %v6794_v7  ;;  %v127_v37 = vrot.slane %v5276_v18, 1  ;;  %v31_v0 = vld [vmem:[%s6788_s0 + $0x48] sm:$0xff]  ;;  %v5151_v1 = vld [vmem:[%s6789_s1] sm:$0xff]  }
   0x9   :  { %v94_v33 = vor.u32 %v93_v23, %v89_v21  ;;  %v96_v38 = vshrl.u32 %v5289_v25, 16  ;;  %v54_v39 = vshrl.u32 %v5276_v18, 16  ;;  %v58_v43 = vrot.slane %v56_v31, 1  ;;  %s5197_s0 = smov 96  }
   0xa   :  { %146 = vrot.lane.b32.xlu1 %v132_v19, %s5194_s13  ;;  %112 = vrot.lane.b32.xlu0 %v87_v28, %s5195_s22  ;;  %v52_v41 = vor.u32 %v51_v34, %v47_v30  ;;  %v100_v42 = vrot.slane %v98_v35, 1  ;;  %v63_v44 = vshll.u32 %v5310_v36, 16  ;;  %v61_v47 = vshrl.u32 %v5310_v36, 16 }
   0xb   :  { %5130 = vmatpush3.bf16.msra.mxu1 %v5147_v32  ;;  %5042 = vmatpush3.bf16.msra.mxu0 %v5147_v32  ;;  %v59_v50 = vor.u32 %v58_v43, %v54_v39  ;;  %v5343_v52 = vpack.c.bf16 %v29_v46, %v28_v45  ;;  %v133_v53 = vrot.slane %v5289_v25, 1  ;;  %v1705_v54 = vrot.slane %v47_v30, 1 }
   0xc   :  { %5125 = vmatprep.subr.bf16.mxu1 %v6794_v7  ;;  %5043 = vmatprep.subr.bf16.mxu0 %v6794_v7  ;;  %v101_v49 = vor.u32 %v100_v42, %v96_v38  ;;  %v65_v51 = vrot.slane %v63_v44, 1  ;;  %v1706_v55 = vrot.slane %v49_v24, 2  ;;  %v128_v56 = vrot.slane %v5310_v36, 1 }
   0xd   :  { %v1708_v57 = vrot.slane %v54_v39, 1  ;;  %v1709_v61 = vrot.slane %v56_v31, 2  ;;  %v68_v62 = vshrl.u32 %v5343_v52, 16  ;;  %v70_v63 = vshll.u32 %v5343_v52, 16 }
   0xe   :  { %114 = vrot.lane.b32.xlu0 %v94_v33, %s5195_s22  ;;  %134 = vrot.lane.b32.xlu1 %v126_v29, %s5194_s13  ;;  %v66_v60 = vor.u32 %v65_v51, %v61_v47  ;;  %v1707_v2 = vor.u32 %v1706_v55, %v1705_v54  ;;  %v5371_v5 = vpack.c.bf16 %v31_v0, %v30_v58  ;;  %v129_v15 = vrot.slane %v5343_v52, 1 }
   0xf   :  { %5131 = vmatpush3.bf16.msra.mxu1 %v5148_v40  ;;  %5044 = vmatpush3.bf16.msra.mxu0 %v5148_v40  ;;  %v72_v4 = vrot.slane %v70_v63, 1  ;;  %v1710_v6 = vor.u32 %v1709_v61, %v1708_v57 }
  0x10   :  { %5126 = vmatprep.subr.bf16.mxu1 %v6794_v7  ;;  %5045 = vmatprep.subr.bf16.mxu0 %v6794_v7  ;;  %v77_v11 = vshll.u32 %v5371_v5, 16  ;;  %v130_v12 = vrot.slane %v5371_v5, 1 }
  0x11   :  { %v73_v10 = vor.u32 %v72_v4, %v68_v62 }
  0x12   :  { %136 = vrot.lane.b32.xlu1 %v127_v37, %s5194_s13  ;;  %102 = vrot.lane.b32.xlu0 %v52_v41, %s5195_s22 }
  0x13   :  { %5132 = vmatpush3.bf16.msra.mxu1 %v5149_v48  ;;  %5046 = vmatpush3.bf16.msra.mxu0 %v5149_v48 }
  0x14   :  { %5127 = vmatprep.subr.bf16.mxu1 %v6794_v7  ;;  %5047 = vmatprep.subr.bf16.mxu0 %v6794_v7 }
  0x16   :  { %116 = vrot.lane.b32.xlu1 %v101_v49, %s5195_s22  ;;  %104 = vrot.lane.b32.xlu0 %v59_v50, %s5195_s22 }
  0x17   :  { %5133 = vmatpush3.bf16.msra.mxu1 %v5150_v59  ;;  %5048 = vmatpush3.bf16.msra.mxu0 %v5150_v59 }
  0x18   :  { %5128 = vmatprep.subr.bf16.mxu1 %v6794_v7  ;;  %5049 = vmatprep.subr.bf16.mxu0 %v6794_v7 }
  0x1a   :  { %148 = vrot.lane.b32.xlu1 %v133_v53, %s5194_s13  ;;  %106 = vrot.lane.b32.xlu0 %v66_v60, %s5195_s22 }
  0x1b   :  { %5134 = vmatpush3.bf16.msra.mxu1 %v5151_v1  ;;  %5050 = vmatpush3.bf16.msra.mxu0 %v5151_v1 }
  0x1c   :  { %5079 = vmatprep.subr.bf16.mxu1 %v6794_v7 }
  0x1e   :  { %1729 = vrot.lane.b32.xlu1 %v1707_v2, %s5197_s0  ;;  %138 = vrot.lane.b32.xlu0 %v128_v56, %s5194_s13 }
  0x1f   :  { %10 = vsyncpa [#allocation3], 0  ;;  %v1714_v16 = vrot.slane %v68_v62, 1  ;;  %v1715_v19 = vrot.slane %v70_v63, 2  ;;  %v75_v20 = vshrl.u32 %v5371_v5, 16  ;;  %v79_v22 = vrot.slane %v77_v11, 1 }
  0x20   :  { %v1720_v23 = vrot.slane %v82_v13, 1  ;;  %v1721_v24 = vrot.slane %v84_v14, 2  ;;  %v1711_v28 = vrot.slane %v61_v47, 1  ;;  %v1712_v29 = vrot.slane %v63_v44, 2  ;;  %s5201_s28 = smov 16   ;;  %s5203_s29 = smov [#allocation2]  }
  0x21   :  { %v1716_v26 = vor.u32 %v1715_v19, %v1714_v16  ;;  %v80_v27 = vor.u32 %v79_v22, %v75_v20  ;;  %v1726_v31 = vrot.slane %v96_v38, 1  ;;  %v1727_v14 = vrot.slane %v98_v35, 2  ;;  %s4917_s30 = sshll.u32 %s5203_s29, 4  ;;  %s4918_s30 = int_to_ptr.vmem [resolvable:$true] %s4917_s30 }
  0x22   :  { %1731 = vrot.lane.b32.xlu1 %v1710_v6, %s5197_s0  ;;  %108 = vrot.lane.b32.xlu0 %v73_v10, %s5195_s22  ;;  %v1722_v30 = vor.u32 %v1721_v24, %v1720_v23  ;;  %v1713_v13 = vor.u32 %v1712_v29, %v1711_v28  ;;  %v1717_v32 = vrot.slane %v75_v20, 1  ;;  %v1718_v33 = vrot.slane %v77_v11, 2  ;;  %s5171_s6 = scalar_lea.vmem %s4918_s30, 128  ;;  %p5176_p1 = scmp.lt.s32.totalorder %s4918_s30, %s4918_s30 }
  0x23   :  { %v1728_v34 = vor.u32 %v1727_v14, %v1726_v31  ;;  %v1723_v39 = vrot.slane %v89_v21, 1  ;;  %v1724_v38 = vrot.slane %v91_v17, 2  ;;  %v6796_v35 = vmov 0   ;;  %p5172_p0 = scmp.ne.s32.totalorder %s4918_s30, %s5171_s6  ;;  %p5177_p2 = scmp.lt.s32.totalorder %s5171_s6, %s5171_s6 }
  0x24   :  { %v1719_v37 = vor.u32 %v1718_v33, %v1717_v32  ;;  %4606 = vmatprep.subr.bf16.mxu0 %v6796_v35  ;;  %v5199_v41 = vmov 1966171168   ;;  %v208_v43 = vlaneseq  ;;  %vm150_vm1 = vcmask 261120  }
  0x25   :  { %v1725_v40 = vor.u32 %v1724_v38, %v1723_v39  ;;  %v206_v42 = vunpack.c.l.s4 %v5199_v41  ;;  %vm167_vm2 = vcmask 523264   ;;  %vm967_vm3 = vcmask 785408   ;;  %p5178_p3 = por %p5177_p2, %p5176_p1 }
  0x26   :  { %142 = vrot.lane.b32.xlu1 %v130_v12, %s5194_s13  ;;  %140 = vrot.lane.b32.xlu0 %v129_v15, %s5194_s13  ;;  %v209_v45 = vshrl.u32 %v208_v43, 7  ;;  %v5200_v12 = vmov 1983009808   ;;  %v4250_v14 = vrot.slane %v5258_v9, 2  ;;  %vm1613_vm4 = vcmask 62464  }
  0x27   :  { %v207_v44 = vunpack.c.0.s8 %v206_v42  ;;  %v1094_v15 = vunpack.c.l.s4 %v5200_v12  ;;  %v4251_v42 = vrot.slane %v5276_v18, 2  ;;  %vm1611_vm5 = vcmask 64512   ;;  %p5179_p4 = pnand %p5178_p3, %p5172_p0 }
  0x28   :  { %vm4158_vm6 = vcmask 61440   ;;  %vm4733_vm7 = vcmask 60416   ;;  %vm4834_vm8 = vcmask 1041409   ;;  %vm4837_vm9 = vcmask 1042434  }
  0x29   :  { %v5414_v21 = vsub.s32 %v207_v44, %v209_v45  ;;  %vm4840_vm10 = vcmask 1043459   ;;  %vm4843_vm11 = vcmask 1044484   ;;  %vm4846_vm12 = vcmask 1045509  }
  0x2a   :  { %1735 = vrot.lane.b32.xlu1 %v1716_v26, %s5197_s0  ;;  %110 = vrot.lane.b32.xlu0 %v80_v27, %s5195_s22  ;;  %vm4849_vm13 = vcmask 1046534   ;;  %vm4852_vm14 = vcmask 1047559   ;;  %vm4906_vm15 = vcmask 130048  }
  0x2e   :  { %1739 = vrot.lane.b32.xlu1 %v1722_v30, %s5197_s0  ;;  %1733 = vrot.lane.b32.xlu0 %v1713_v13, %s5197_s0  ;;  %v1095_v30 = vunpack.c.0.s8 %v1094_v15 }
  0x32   :  { %1743 = vrot.lane.b32.xlu1 %v1728_v34, %s5197_s0  ;;  %1737 = vrot.lane.b32.xlu0 %v1719_v37, %s5197_s0 }
  0x36   :  { %1741 = vrot.lane.b32.xlu0 %v1725_v40, %s5197_s0  ;;  %v5463_v40 = vsub.s32 %v1095_v30, %v209_v45 }
  0x78   :  { %v145_v46 = vpop.permute.xlu1 %144 }
  0x7c   :  { %v147_v17 = vpop.permute.xlu1 %146  ;;  %v113_v47 = vpop.permute.xlu0 %112 }
  0x7d   :  { %v162_v48 = vsel %vm150_vm1, %v5243_v3, %v113_v47 }
  0x7e   :  { %v5419_v49 = vsel %vm167_vm2, %v162_v48, %v145_v46 }
  0x7f   :  { %v444_v50 = vcombine.high %v5419_v49, %v5419_v49  ;;  %v451_v51 = vrot.slane %v5419_v49, %v5414_v21 }
  0x80   :  { %v135_v53 = vpop.permute.xlu1 %134  ;;  %v115_v57 = vpop.permute.xlu0 %114 }
  0x81   :  { %v458_v54 = vrot.slane %v444_v50, %v5414_v21  ;;  %v459_v55 = vcombine.high %v451_v51, %v451_v51  ;;  %v164_v61 = vsel %vm150_vm1, %v5256_v8, %v115_v57  ;;  %v5440_v10 = vrot.slane %v451_v51, %v5414_v21 }
  0x82   :  { %v5433_v63 = vsel %vm167_vm2, %v164_v61, %v147_v17  ;;  %v4253_v17 = vrot.slane %v5343_v52, 2  ;;  %v4255_v50 = vrot.slane %v5243_v3, 2  ;;  %v4252_v51 = vrot.slane %v5310_v36, 2 }
  0x83   :  { %v481_v56 = vrot.slane %v459_v55, %v5414_v21  ;;  %v474_v59 = vrot.slane %v458_v54, %v5414_v21  ;;  %v492_v2 = vcombine.high %v5433_v63, %v5433_v63  ;;  %v460_v6 = vcombine.high %v458_v54, %v458_v54 }
  0x84   :  { %v137_v58 = vpop.permute.xlu1 %136  ;;  %v103_v0 = vpop.permute.xlu0 %102  ;;  %v499_v11 = vrot.slane %v5433_v63, %v5414_v21  ;;  %v489_v26 = vcombine.high %v5440_v10, %v5440_v10 }
  0x85   :  { %v491_v60 = vcombine.high %v481_v56, %v481_v56  ;;  %v152_v4 = vsel %vm150_vm1, %v5258_v9, %v103_v0  ;;  %v506_v22 = vrot.slane %v492_v2, %v5414_v21  ;;  %v488_v24 = vrot.slane %v460_v6, %v5414_v21 }
  0x86   :  { %v169_v20 = vsel %vm167_vm2, %v152_v4, %v135_v53  ;;  %v490_v27 = vcombine.high %v474_v59, %v474_v59  ;;  %v507_v28 = vcombine.high %v499_v11, %v499_v11  ;;  %v5455_v32 = vcombine.low %v481_v56, %v489_v26  ;;  %v5156_v56 = vld [vmem:[%s6791_s3 + $0x30] sm:$0xff]  }
  0x87   :  { %v5430_v62 = vcombine.low %v491_v60, %v474_v59  ;;  %v204_v31 = vcombine.high %v169_v20, %v169_v20  ;;  %v508_v13 = vcombine.high %v506_v22, %v506_v22  ;;  %v211_v37 = vrot.slane %v169_v20, %v5414_v21 }
  0x88   :  { %v117_v1 = vpop.permute.xlu1 %116  ;;  %v105_v23 = vpop.permute.xlu0 %104  ;;  %v5457_v33 = vcombine.low %v488_v24, %v490_v27  ;;  %v529_v39 = vrot.slane %v507_v28, %v5414_v21  ;;  %v522_v43 = vrot.slane %v506_v22, %v5414_v21  ;;  %v515_v47 = vrot.slane %v499_v11, %v5414_v21 }
  0x89   :  { %v166_v16 = vsel %vm150_vm1, %v5289_v25, %v117_v1  ;;  %v218_v41 = vrot.slane %v204_v31, %v5414_v21  ;;  %v154_v44 = vsel %vm150_vm1, %v5276_v18, %v105_v23  ;;  %v536_v48 = vrot.slane %v508_v13, %v5414_v21  ;;  %v5157_v18 = vld [vmem:[%s6790_s2 + $0x20] sm:$0xff]  }
  0x8a   :  { %v219_v54 = vcombine.high %v211_v37, %v211_v37  ;;  %v843_v55 = vrot.slane %v5457_v33, %v5414_v21  ;;  %v834_v57 = vcombine.low %v515_v47, %v529_v39  ;;  %v4928_v59 = vcombine.high %v515_v47, %v529_v39 }
  0x8b   :  { %v220_v60 = vcombine.high %v218_v41, %v218_v41  ;;  %v5482_v61 = vsel %vm167_vm2, %v154_v44, %v137_v58  ;;  %v538_v0 = vcombine.high %v522_v43, %v522_v43  ;;  %v836_v6 = vcombine.low %v522_v43, %v536_v48 }
  0x8c   :  { %v149_v19 = vpop.permute.xlu1 %148  ;;  %v107_v38 = vpop.permute.xlu0 %106  ;;  %v5490_v12 = vrot.slane %v218_v41, %v5414_v21  ;;  %v241_v22 = vrot.slane %v219_v54, %v5414_v21  ;;  %v850_v23 = vrot.slane %v834_v57, %v5414_v21  ;;  %v857_v33 = vrot.slane %v4928_v59, %v5414_v21 }
  0x8d   :  { %v5452_v29 = vsel %vm167_vm2, %v166_v16, %v149_v19  ;;  %v156_v11 = vsel %vm150_vm1, %v5310_v36, %v107_v38  ;;  %v252_v16 = vcombine.high %v5482_v61, %v5482_v61  ;;  %v227_v19 = vrot.slane %v211_v37, %v5414_v21 }
  0x8e   :  { %v547_v34 = vrot.slane %v5452_v29, %v5414_v21  ;;  %v540_v46 = vcombine.high %v5452_v29, %v5452_v29  ;;  %v248_v24 = vrot.slane %v220_v60, %v5414_v21  ;;  %v864_v39 = vrot.slane %v836_v6, %v5414_v21 }
  0x8f   :  { %v5512_v37 = vrot.slane %v252_v16, %v5414_v21  ;;  %v588_v41 = vcombine.low %v227_v19, %v241_v22  ;;  %v4925_v43 = vcombine.high %v227_v19, %v241_v22  ;;  %v865_v6 = vcombine.low %v843_v55, %v850_v23 }
  0x90   :  { %v1730_v45 = vpop.permute.xlu1 %1729  ;;  %v555_v53 = vcombine.high %v547_v34, %v547_v34  ;;  %v554_v1 = vrot.slane %v540_v46, %v5414_v21  ;;  %v563_v2 = vrot.slane %v547_v34, %v5414_v21  ;;  %v139_v15 = vpop.permute.xlu0 %138  ;;  %v250_v34 = vcombine.high %v5490_v12, %v5490_v12 }
  0x91   :  { %v1746_v4 = vsel %vm967_vm3, %v169_v20, %v1730_v45  ;;  %v5499_v20 = vrot.slane %v5482_v61, %v5414_v21  ;;  %v5506_v13 = vsel %vm167_vm2, %v156_v11, %v139_v15  ;;  %v590_v46 = vcombine.low %v5490_v12, %v248_v24 }
  0x92   :  { %v577_v58 = vrot.slane %v555_v53, %v5414_v21  ;;  %v1785_v26 = vcombine.high %v1746_v4, %v1746_v4  ;;  %v1792_v27 = vrot.slane %v1746_v4, %v5414_v21  ;;  %v556_v28 = vcombine.high %v554_v1, %v554_v1 }
  0x93   :  { %v570_v30 = vrot.slane %v554_v1, %v5414_v21  ;;  %v585_v31 = vcombine.high %v563_v2, %v563_v2  ;;  %v5517_v44 = vrot.slane %v5499_v20, %v5414_v21  ;;  %v300_v45 = vcombine.high %v5506_v13, %v5506_v13 }
  0x94   :  { %v587_v38 = vcombine.high %v577_v58, %v577_v58  ;;  %v1799_v47 = vrot.slane %v1785_v26, %v5414_v21  ;;  %v1800_v48 = vcombine.high %v1792_v27, %v1792_v27  ;;  %v584_v53 = vrot.slane %v556_v28, %v5414_v21 }
  0x95   :  { %v586_v54 = vcombine.high %v570_v30, %v570_v30  ;;  %v5524_v57 = vcombine.low %v538_v0, %v563_v2  ;;  %v5526_v59 = vcombine.low %v577_v58, %v585_v31  ;;  %v4278_v60 = vcombine.low %v1746_v4, %v4250_v14 }
  0x96   :  { %v307_v1 = vrot.slane %v5506_v13, %v5414_v21  ;;  %v866_v11 = vcombine.low %v857_v33, %v864_v39  ;;  %v5532_v12 = vcombine.low %v587_v38, %v570_v30  ;;  %v598_v15 = vrot.slane %v588_v41, %v5414_v21 }
  0x97   :  { %v5537_v16 = vcombine.high %v1746_v4, %v4250_v14  ;;  %v591_v0 = vcombine.low %v250_v34, %v5517_v44  ;;  %v1801_v2 = vcombine.high %v1799_v47, %v1799_v47  ;;  %v1822_v58 = vrot.slane %v1800_v48, %v5414_v21 }
  0x98   :  { %v314_v19 = vrot.slane %v300_v45, %v5414_v21  ;;  %v880_v22 = vrot.slane %v866_v11, %v5414_v21  ;;  %v5543_v24 = vcombine.low %v584_v53, %v586_v54  ;;  %v892_v55 = vrot.slane %v5524_v57, %v5414_v21  ;;  %v109_v53 = vpop.permute.xlu0 %108  ;;  %v5159_v57 = vld [vmem:[%s6790_s2 + $0x18] sm:$0xff]  }
  0x99   :  { %v899_v23 = vrot.slane %v5526_v59, %v5414_v21  ;;  %v605_v9 = vrot.slane %v4925_v43, %v5414_v21  ;;  %v1808_v14 = vrot.slane %v1792_v27, %v5414_v21  ;;  %v4286_v4 = vrot.slane %v4278_v60, %v5463_v40  ;;  %v5152_v27 = vld [vmem:[%s6790_s2 + $0x38] sm:$0xff]   ;;  %v1732_v43 = vpop.permute.xlu1 %1731 }
  0x9a   :  { %v315_v26 = vcombine.high %v307_v1, %v307_v1  ;;  %v873_v28 = vrot.slane %v865_v6, %v5414_v21  ;;  %v906_v30 = vrot.slane %v5532_v12, %v5414_v21  ;;  %v5556_v31 = vrot.slane %v1799_v47, %v5414_v21 }
  0x9b   :  { %v4293_v33 = vrot.slane %v5537_v16, %v5463_v40  ;;  %v619_v34 = vrot.slane %v591_v0, %v5414_v21  ;;  %v1829_v39 = vrot.slane %v1801_v2, %v5414_v21  ;;  %v2325_v38 = vcombine.low %v1808_v14, %v1822_v58 }
  0x9c   :  { %v316_v41 = vcombine.high %v314_v19, %v314_v19  ;;  %v881_v48 = vcombine.low %v873_v28, %v880_v22  ;;  %v4971_v45 = vcombine.high %v1808_v14, %v1822_v58  ;;  %v267_v47 = vcombine.high %v5499_v20, %v5499_v20 }
  0x9d   :  { %v612_v54 = vrot.slane %v590_v46, %v5414_v21  ;;  %v620_v60 = vcombine.low %v598_v15, %v605_v9  ;;  %v4294_v6 = vcombine.high %v4286_v4, %v4286_v4  ;;  %v323_v11 = vrot.slane %v307_v1, %v5414_v21  ;;  %v5153_v46 = vld [vmem:[%s6790_s2 + $0x30] sm:$0xff]  }
  0x9e   :  { %v337_v0 = vrot.slane %v315_v26, %v5414_v21  ;;  %v268_v2 = vcombine.high %v5512_v37, %v5512_v37  ;;  %5072 = vmatmul.mubr.msk.bf16.vlgmr.msra.gmra.mxu1 %vm967_vm3, %v881_v48  ;;  %v1748_v58 = vsel %vm967_vm3, %v5482_v61, %v1732_v43  ;;  %v2327_v15 = vcombine.low %v5556_v31, %v1829_v39  ;;  %v5154_v48 = vld [vmem:[%s6791_s3 + $0x38] sm:$0xff]  }
  0x9f   :  { %5080 = vmatpush3.bf16.msra.mxu1 %v5152_v27  ;;  %v621_v22 = vcombine.low %v612_v54, %v619_v34  ;;  %v628_v20 = vrot.slane %v620_v60, %v5414_v21  ;;  %5075 = vmatprep.mubr.msk.bf16.mxu1 %vm5196_vm0, %v6794_v7  ;;  %v5584_v9 = vrot.slane %v2325_v38, %v5414_v21  ;;  %v141_v54 = vpop.permute.xlu0 %140 }
  0xa0   :  { %v5587_v61 = vrot.slane %v314_v19, %v5414_v21  ;;  %v344_v14 = vrot.slane %v316_v41, %v5414_v21  ;;  %5081 = vmatprep.subr.bf16.mxu1 %v6794_v7  ;;  %v5592_v26 = vrot.slane %v4971_v45, %v5414_v21  ;;  %v282_v28 = vrot.slane %v5512_v37, %v5414_v21  ;;  %v5602_v41 = vpop.permute.xlu1 %142 }
  0xa1   :  { %v289_v34 = vrot.slane %v267_v47, %v5414_v21  ;;  %v635_v27 = vrot.slane %v621_v22, %v5414_v21  ;;  %v1831_v39 = vcombine.high %v5556_v31, %v5556_v31  ;;  %v5600_v38 = vcombine.low %v4286_v4, %v4294_v6  ;;  %v5155_v4 = vld [vmem:[%s6790_s2 + $0x28] sm:$0xff]  }
  0xa2   :  { %v640_v19 = vcombine.low %v323_v11, %v337_v0  ;;  %v1833_v43 = vcombine.high %v1748_v58, %v1748_v58  ;;  %v4926_v45 = vcombine.high %v323_v11, %v337_v0  ;;  %v1840_v37 = vrot.slane %v1748_v58, %v5414_v21 }
  0xa3   :  { %v158_v47 = vsel %vm150_vm1, %v5343_v52, %v109_v53  ;;  %v636_v60 = vcombine.low %v628_v20, %v635_v27  ;;  %5082 = vmatpush3.bf16.msra.mxu1 %v5153_v46  ;;  %v5614_v6 = vrot.slane %v2327_v15, %v5414_v21  ;;  %v687_v22 = vcombine.low %v5587_v61, %v344_v14 }
  0xa4   :  { %v297_v11 = vcombine.high %v5517_v44, %v5517_v44  ;;  %v4295_v0 = vcombine.low %v1748_v58, %v4251_v42  ;;  %5083 = vmatprep.subr.bf16.mxu1 %v6794_v7  ;;  %v296_v20 = vrot.slane %v268_v2, %v5414_v21  ;;  %v298_v46 = vcombine.high %v282_v28, %v282_v28 }
  0xa5   :  { %v299_v27 = vcombine.high %v289_v34, %v289_v34  ;;  %5052 = vmatmul.mubr.msk.bf16.vlgmr.msra.gmra.mxu0 %vm967_vm3, %v636_v60  ;;  %v5627_v15 = vrot.slane %v640_v19, %v5414_v21  ;;  %v1847_v14 = vrot.slane %v1833_v43, %v5414_v21  ;;  %v4296_v44 = vcombine.high %v1748_v58, %v4251_v42 }
  0xa6   :  { %v175_v1 = vsel %vm167_vm2, %v158_v47, %v141_v54  ;;  %4607 = vmatpush1.bf16.msra.mxu0 %v5154_v48  ;;  %v5637_v2 = vrot.slane %v4926_v45, %v5414_v21  ;;  %v1848_v53 = vcombine.high %v1840_v37, %v1840_v37  ;;  %v1856_v60 = vrot.slane %v1840_v37, %v5414_v21  ;;  %v1736_v48 = vpop.permute.xlu1 %1735 }
  0xa7   :  { %5084 = vmatpush3.bf16.msra.mxu1 %v5155_v4  ;;  %4608 = vmatprep.subr.bf16.mxu0 %v6796_v35  ;;  %v5646_v58 = vrot.slane %v687_v22, %v5414_v21  ;;  %v5648_v19 = vcombine.low %v289_v34, %v297_v11  ;;  %v4303_v43 = vrot.slane %v4295_v0, %v5463_v40  ;;  %v5158_v0 = vld [vmem:[%s6791_s3 + $0x28] sm:$0xff]  }
  0xa8   :  { %5085 = vmatprep.subr.bf16.mxu1 %v6794_v7  ;;  %5055 = vmatprep.mubr.msk.bf16.mxu0 %vm5196_vm0, %v6794_v7  ;;  %v5655_v37 = vcombine.low %v299_v27, %v282_v28  ;;  %v5657_v47 = vcombine.low %v296_v20, %v298_v46  ;;  %v348_v54 = vcombine.high %v175_v1, %v175_v1 }
  0xa9   :  { %v355_v4 = vrot.slane %v175_v1, %v5414_v21  ;;  %v1849_v22 = vcombine.high %v1847_v14, %v1847_v14  ;;  %v4310_v34 = vrot.slane %v4296_v44, %v5463_v40  ;;  %v913_v11 = vrot.slane %v5543_v24, %v5414_v21 }
  0xaa   :  { %4609 = vmatpush1.bf16.msra.mxu0 %v5156_v56  ;;  %v914_v28 = vcombine.low %v892_v55, %v899_v23  ;;  %v5673_v20 = vrot.slane %v1847_v14, %v5414_v21  ;;  %v5676_v46 = vrot.slane %v1848_v53, %v5414_v21  ;;  %v2183_v56 = vunpack.i.h.s16 %v1856_v60 }
  0xab   :  { %v5679_v24 = vsel %vm967_vm3, %v175_v1, %v1736_v48  ;;  %5086 = vmatpush3.bf16.msra.mxu1 %v5157_v18  ;;  %v5684_v59 = vcombine.high %v1856_v60, %v1856_v60  ;;  %v4311_v55 = vcombine.high %v4303_v43, %v4303_v43  ;;  %v346_v23 = vcombine.high %v5587_v61, %v5587_v61  ;;  %v5161_v48 = vld [vmem:[%s6790_s2 + $0x10] sm:$0xff]  }
  0xac   :  { %v915_v53 = vcombine.low %v906_v30, %v913_v11  ;;  %4610 = vmatprep.subr.bf16.mxu0 %v6796_v35  ;;  %v5695_v1 = vpack.i.b16 %v1856_v60, %v1831_v39  ;;  %v362_v27 = vrot.slane %v348_v54, %v5414_v21  ;;  %v363_v14 = vcombine.high %v355_v4, %v355_v4  ;;  %v5160_v39 = vld [vmem:[%s6791_s3 + $0x20] sm:$0xff]  }
  0xad   :  { %v371_v44 = vrot.slane %v355_v4, %v5414_v21  ;;  %5087 = vmatprep.subr.bf16.mxu1 %v6794_v7  ;;  %v5703_v61 = vcombine.low %v4293_v33, %v4303_v43  ;;  %v1929_v12 = vcombine.high %v5679_v24, %v5679_v24  ;;  %v922_v30 = vrot.slane %v914_v28, %v5414_v21  ;;  %v111_v43 = vpop.permute.xlu0 %110 }
  0xae   :  { %v929_v31 = vrot.slane %v915_v53, %v5414_v21  ;;  %4611 = vmatpush1.bf16.msra.mxu0 %v5158_v0  ;;  %v5713_v60 = vrot.slane %v1849_v22, %v5414_v21  ;;  %v5717_v16 = vcombine.high %v5676_v46, %v5676_v46  ;;  %v2191_v33 = vunpack.i.h.s16 %v5673_v20  ;;  %v1740_v53 = vpop.permute.xlu1 %1739 }
  0xaf   :  { %v4944_v18 = vpack.i.b16 %v5676_v46, %v2183_v56  ;;  %5088 = vmatpush3.bf16.msra.mxu1 %v5159_v57  ;;  %v5725_v4 = vcombine.low %v4311_v55, %v4310_v34  ;;  %v1936_v22 = vrot.slane %v5679_v24, %v5414_v21  ;;  %4612 = vmatprep.subr.bf16.mxu0 %v6796_v35 }
  0xb0   :  { %v930_v11 = vcombine.low %v922_v30, %v929_v31  ;;  %5089 = vmatprep.subr.bf16.mxu1 %v6794_v7  ;;  %v364_v28 = vcombine.high %v362_v27, %v362_v27  ;;  %v378_v0 = vrot.slane %v362_v27, %v5414_v21  ;;  %v385_v56 = vrot.slane %v363_v14, %v5414_v21  ;;  %v5162_v27 = vld [vmem:[%s6791_s3 + $0x18] sm:$0xff]  }
  0xb1   :  { %v393_v57 = vcombine.high %v371_v44, %v371_v44  ;;  %v1943_v34 = vrot.slane %v1929_v12, %v5414_v21  ;;  %v5737_v55 = vsel %vm150_vm1, %v5371_v5, %v111_v43  ;;  %v647_v30 = vrot.slane %v5648_v19, %v5414_v21  ;;  %v5163_v19 = vld [vmem:[%s6790_s2 + $0x8] sm:$0xff]  }
  0xb2   :  { %5076 = vmatmul.mubr.msk.bf16.gmra.mxu1 %vm967_vm3, %v930_v11  ;;  %4613 = vmatpush1.bf16.msra.mxu0 %v5160_v39  ;;  %v5746_v14 = vpack.i.b16 %v5713_v60, %v2191_v33  ;;  %v2328_v31 = vcombine.low %v5695_v1, %v4944_v18  ;;  %v395_v12 = vcombine.high %v385_v56, %v385_v56 }
  0xb3   :  { %v4329_v43 = vcombine.low %v5679_v24, %v4253_v17  ;;  %5090 = vmatpush3.bf16.msra.mxu1 %v5161_v48  ;;  %v1944_v39 = vcombine.high %v1936_v22, %v1936_v22  ;;  %v5757_v11 = vsel %vm967_vm3, %v5419_v49, %v1740_v53  ;;  %v654_v33 = vrot.slane %v5655_v37, %v5414_v21 }
  0xb4   :  { %v661_v1 = vrot.slane %v5657_v47, %v5414_v21  ;;  %4614 = vmatprep.subr.bf16.mxu0 %v6796_v35  ;;  %v392_v18 = vrot.slane %v364_v28, %v5414_v21  ;;  %v394_v48 = vcombine.high %v378_v0, %v378_v0  ;;  %v5765_v45 = vcombine.low %v346_v23, %v371_v44  ;;  %v5164_v47 = vld [vmem:[%s6791_s3 + $0x10] sm:$0xff]  }
  0xb5   :  { %v5767_v54 = vcombine.low %v385_v56, %v393_v57  ;;  %5091 = vmatprep.subr.bf16.mxu1 %v6794_v7  ;;  %v1945_v42 = vcombine.high %v1943_v34, %v1943_v34  ;;  %v5771_v49 = vrot.slane %v1936_v22, %v5414_v21  ;;  %v669_v53 = vcombine.low %v647_v30, %v654_v33 }
  0xb6   :  { %v670_v37 = vcombine.low %v661_v1, %v5627_v15  ;;  %4615 = vmatpush1.bf16.msra.mxu0 %v5162_v27  ;;  %v5777_v28 = vcombine.low %v395_v12, %v378_v0  ;;  %v5780_v23 = vrot.slane %v1943_v34, %v5414_v21  ;;  %v2025_v44 = vcombine.high %v5757_v11, %v5757_v11  ;;  %v5165_v15 = vld [vmem:[%s6790_s2] sm:$0xff]  }
  0xb7   :  { %5092 = vmatpush3.bf16.msra.mxu1 %v5163_v19  ;;  %v5789_v22 = vrot.slane %v2328_v31, %v5414_v21  ;;  %v5792_v57 = vrot.slane %v1944_v39, %v5414_v21  ;;  %v4330_v0 = vcombine.high %v5679_v24, %v4253_v17  ;;  %v677_v34 = vrot.slane %v669_v53, %v5414_v21  ;;  %v1734_v19 = vpop.permute.xlu0 %1733 }
  0xb8   :  { %4616 = vmatprep.subr.bf16.mxu0 %v6796_v35  ;;  %v5803_v12 = vcombine.low %v392_v18, %v394_v48  ;;  %v5806_v31 = vrot.slane %v4329_v43, %v5463_v40  ;;  %5093 = vmatprep.subr.bf16.mxu1 %v6794_v7  ;;  %v5810_v52 = vrot.slane %v1945_v42, %v5414_v21  ;;  %v2217_v48 = vunpack.i.h.s16 %v5780_v23 }
  0xb9   :  { %v5814_v17 = vcombine.high %v5771_v49, %v5771_v49  ;;  %v2032_v24 = vrot.slane %v5757_v11, %v5414_v21  ;;  %v684_v39 = vrot.slane %v670_v37, %v5414_v21  ;;  %v2039_v1 = vrot.slane %v2025_v44, %v5414_v21  ;;  %5095 = vmatprep.mubr.msk.bf16.mxu1 %vm5196_vm0, %v6794_v7 }
  0xba   :  { %4617 = vmatpush1.bf16.msra.mxu0 %v5164_v47  ;;  %v5827_v18 = vcombine.high %v5792_v57, %v5792_v57  ;;  %v4344_v53 = vrot.slane %v4330_v0, %v5463_v40  ;;  %v5166_v47 = vld [vmem:[%s6791_s3 + $0x8] sm:$0xff]   ;;  %v4345_v33 = vcombine.high %v5806_v31, %v5806_v31  ;;  %v4363_v44 = vcombine.low %v5757_v11, %v4255_v50 }
  0xbb   :  { %5094 = vmatpush3.bf16.msra.mxu1 %v5165_v15  ;;  %v685_v37 = vcombine.low %v677_v34, %v684_v39  ;;  %4618 = vmatprep.subr.bf16.mxu0 %v6796_v35  ;;  %v1750_v15 = vsel %vm967_vm3, %v5506_v13, %v1734_v19  ;;  %v5845_v0 = vsel %vm167_vm2, %v5737_v55, %v5602_v41  ;;  %v1738_v8 = vpop.permute.xlu0 %1737 }
  0xbc   :  { %v2040_v42 = vcombine.high %v2032_v24, %v2032_v24  ;;  %v5852_v43 = vrot.slane %v2032_v24, %v5414_v21  ;;  %v2041_v30 = vcombine.high %v2039_v1, %v2039_v1  ;;  %v5856_v13 = vrot.slane %v2039_v1, %v5414_v21  ;;  %v5167_v1 = vld [vmem:[%s6791_s3] sm:$0xff]  }
  0xbd   :  { %5056 = vmatmul.mubr.msk.bf16.gmra.mxu0 %vm967_vm3, %v685_v37  ;;  %v396_v41 = vcombine.high %v5845_v0, %v5845_v0  ;;  %v403_v55 = vrot.slane %v5845_v0, %v5414_v21  ;;  %v5866_v24 = vpack.i.b16 %v5810_v52, %v2217_v48  ;;  %v1881_v39 = vcombine.high %v1750_v15, %v1750_v15 }
  0xbe   :  { %5059 = vmatprep.mubr.msk.bf16.mxu0 %vm5196_vm0, %v6794_v7  ;;  %v1888_v37 = vrot.slane %v1750_v15, %v5414_v21  ;;  %4619 = vmatpush1.bf16.msra.mxu0 %v5166_v47  ;;  %v5872_v34 = vcombine.low %v4345_v33, %v4344_v53  ;;  %v5877_v27 = vcombine.high %v5757_v11, %v4255_v50  ;;  %v1744_v53 = vpop.permute.xlu1 %1743 }
  0xbf   :  { %v5880_v19 = vrot.slane %v4363_v44, %v5463_v40  ;;  %v411_v48 = vcombine.high %v403_v55, %v403_v55  ;;  %4620 = vmatprep.subr.bf16.mxu0 %v6796_v35  ;;  %v5884_v7 = vrot.slane %v2040_v42, %v5414_v21  ;;  %v1879_v47 = vcombine.high %v5673_v20, %v5673_v20 }
  0xc0   :  { %6809 = vst [vmem:[#allocation7_spill] sm:$0xff] %v5872_v34  ;;  %6810 = vst [vmem:[#allocation8_spill] sm:$0xff] %v5877_v27  ;;  %v4312_v33 = vcombine.low %v1750_v15, %v4252_v51  ;;  %v410_v3 = vrot.slane %v396_v41, %v5414_v21  ;;  %v5892_v50 = vrot.slane %v2041_v30, %v5414_v21  ;;  %v2243_v44 = vunpack.i.h.s16 %v5856_v13  ;;  %v5168_v30 = vld [vmem:[%s6791_s3 + $0x48] sm:$0xff]  }
  0xc1   :  { %6811 = vst [vmem:[#allocation9_spill] sm:$0xff] %v5880_v19  ;;  %6812 = vst [vmem:[#allocation10_spill] sm:$0xff] %v5884_v7  ;;  %v5896_v11 = vcombine.high %v5852_v43, %v5852_v43  ;;  %v4313_v42 = vcombine.high %v1750_v15, %v4252_v51  ;;  %v1895_v35 = vrot.slane %v1881_v39, %v5414_v21  ;;  %v6814_v19 = vunpack.i.h.s16 %v5713_v60 }
  0xc2   :  { %v1896_v56 = vcombine.high %v1888_v37, %v1888_v37  ;;  %v419_v25 = vrot.slane %v403_v55, %v5414_v21  ;;  %v433_v27 = vrot.slane %v411_v48, %v5414_v21  ;;  %4621 = vmatpush1.bf16.msra.mxu0 %v5167_v1  ;;  %v5913_v36 = vrot.slane %v1888_v37, %v5414_v21 }
  0xc3   :  { %6813 = vst [vmem:[#allocation11_spill] sm:$0xff] %v5896_v11  ;;  %v5910_v34 = vpack.i.b16 %v1879_v47, %v6814_v19  ;;  %v5917_v51 = vsel %vm967_vm3, %v5452_v29, %v1744_v53  ;;  %v6815_v15 = vmov 0   ;;  %v5922_v39 = vcombine.high %v5884_v7, %v5884_v7 }
  0xc4   :  { %4634 = vmatprep.subr.bf16.mxu0 %v6815_v15  ;;  %v4320_v1 = vrot.slane %v4312_v33, %v5463_v40  ;;  %v412_v60 = vcombine.high %v410_v3, %v410_v3  ;;  %v5928_v37 = vpack.i.b16 %v5892_v50, %v2243_v44  ;;  %v4327_v48 = vrot.slane %v4313_v42, %v5463_v40  ;;  %v5169_v33 = vld [vmem:[%s6791_s3 + $0x40] sm:$0xff]  }
  0xc5   :  { %v426_v29 = vrot.slane %v410_v3, %v5414_v21  ;;  %v1911_v47 = vrot.slane %v1895_v35, %v5414_v21  ;;  %v1918_v53 = vrot.slane %v1896_v56, %v5414_v21  ;;  %v2121_v41 = vcombine.high %v5917_v51, %v5917_v51 }
  0xc6   :  { %6816 = vst [vmem:[#allocation12_spill] sm:$0xff] %v5928_v37  ;;  %v737_v55 = vcombine.low %v419_v25, %v433_v27  ;;  %4635 = vmatpush2.bf16.msra.mxu0 %v5168_v30  ;;  %v1897_v44 = vcombine.high %v1895_v35, %v1895_v35  ;;  %v1926_v42 = vcombine.high %v5913_v36, %v5913_v36 }
  0xc7   :  { %v4927_v19 = vcombine.high %v419_v25, %v433_v27  ;;  %v718_v3 = vcombine.low %v5637_v2, %v5646_v58  ;;  %4636 = vmatprep.subr.bf16.mxu0 %v6815_v15  ;;  %v2376_v56 = vcombine.low %v5910_v34, %v5913_v36  ;;  %v4328_v37 = vcombine.high %v4320_v1, %v4320_v1 }
  0xc8   :  { %v2128_v30 = vrot.slane %v5917_v51, %v5414_v21  ;;  %v440_v11 = vrot.slane %v412_v60, %v5414_v21  ;;  %v5950_v35 = vcombine.low %v4327_v48, %v5806_v31  ;;  %v442_v7 = vcombine.high %v426_v29, %v426_v29 }
  0xc9   :  { %v5954_v25 = vsel %vm967_vm3, %v5845_v0, %v1738_v8  ;;  %v6817_v2 = vrot.slane %v5767_v54, %v5414_v21  ;;  %v6818_v58 = vrot.slane %v5765_v45, %v5414_v21  ;;  %v1927_v34 = vcombine.high %v1911_v47, %v1911_v47 }
  0xca   :  { %v1928_v36 = vcombine.high %v1918_v53, %v1918_v53  ;;  %v5963_v15 = vrot.slane %v2121_v41, %v5414_v21  ;;  %v759_v31 = vrot.slane %v737_v55, %v5414_v21  ;;  %4637 = vmatpush2.bf16.msra.mxu0 %v5169_v33  ;;  %v766_v60 = vrot.slane %v4927_v19, %v5414_v21 }
  0xcb   :  { %v719_v27 = vcombine.low %v6818_v58, %v6817_v2  ;;  %v726_v8 = vrot.slane %v718_v3, %v5414_v21  ;;  %v752_v54 = vrot.slane %v5803_v12, %v5414_v21  ;;  %v5972_v45 = vrot.slane %v1897_v44, %v5414_v21 }
  0xcc   :  { %v2136_v48 = vcombine.high %v2128_v30, %v2128_v30  ;;  %v784_v2 = vcombine.low %v426_v29, %v440_v11  ;;  %v1977_v41 = vcombine.high %v5954_v25, %v5954_v25  ;;  %v2377_v58 = vcombine.low %v1918_v53, %v1926_v42 }
  0xcd   :  { %v733_v0 = vrot.slane %v719_v27, %v5414_v21  ;;  %v5976_v55 = vcombine.low %v4320_v1, %v4328_v37  ;;  %v785_v19 = vcombine.low %v442_v7, %v5440_v10  ;;  %v5980_v3 = vpack.i.b16 %v5771_v49, %v1927_v34 }
  0xce   :  { %v5982_v27 = vcombine.low %v1928_v36, %v1911_v47  ;;  %v2137_v12 = vcombine.high %v5963_v15, %v5963_v15  ;;  %v1984_v11 = vrot.slane %v5954_v25, %v5414_v21  ;;  %v5989_v29 = vrot.slane %v2128_v30, %v5414_v21 }
  0xcf   :  { %v734_v33 = vcombine.low %v726_v8, %v733_v0  ;;  %v6819_v7 = vrot.slane %v5777_v28, %v5414_v21  ;;  %v768_v1 = vcombine.low %v759_v31, %v766_v60  ;;  %v2358_v37 = vcombine.low %v5614_v6, %v5789_v22 }
  0xd0   :  { %v5998_v47 = vrot.slane %v2136_v48, %v5414_v21  ;;  %v1991_v53 = vrot.slane %v1977_v41, %v5414_v21  ;;  %v6820_v44 = vmov 0.0   ;;  %v6821_v42 = vcombine.low %v5584_v9, %v5592_v26 }
  0xd1   :  { %5060 = vmatmul.mubr.msk.bf16.gmra.mxu0 %vm967_vm3, %v734_v33  ;;  %v767_v10 = vcombine.low %v6819_v7, %v752_v54  ;;  %v794_v28 = vrot.slane %v784_v2, %v5414_v21  ;;  %v782_v36 = vrot.slane %v768_v1, %v5414_v21  ;;  %v2372_v6 = vrot.slane %v2358_v37, %v5414_v21  ;;  %v1742_v54 = vpop.permute.xlu0 %1741 }
  0xd2   :  { %5063 = vmatprep.mubr.msk.bf16.mxu0 %vm5196_vm0, %v6820_v44  ;;  %v2365_v30 = vrot.slane %v6821_v42, %v5414_v21  ;;  %v801_v22 = vrot.slane %v785_v19, %v5414_v21  ;;  %v1992_v31 = vcombine.high %v1984_v11, %v1984_v11  ;;  %v6013_v60 = vrot.slane %v1984_v11, %v5414_v21 }
  0xd3   :  { %v775_v34 = vrot.slane %v767_v10, %v5414_v21  ;;  %v815_v8 = vrot.slane %v5430_v62, %v5414_v21  ;;  %v2189_v9 = vunpack.i.h.s16 %v5717_v16  ;;  %v6822_v26 = vrot.slane %v5371_v5, 2 }
  0xd4   :  { %v2373_v48 = vcombine.low %v2365_v30, %v2372_v6  ;;  %v816_v2 = vcombine.low %v794_v28, %v801_v22  ;;  %v6823_v41 = vunpack.i.h.s16 %v5676_v46  ;;  %v1993_v33 = vcombine.high %v1991_v53, %v1991_v53 }
  0xd5   :  { %v6021_v0 = vcombine.low %v5954_v25, %v6822_v26  ;;  %v783_v11 = vcombine.low %v775_v34, %v782_v36  ;;  %v6824_v7 = vrot.slane %v5455_v32, %v5414_v21  ;;  %v6825_v10 = vunpack.i.h.s16 %v5684_v59 }
  0xd6   :  { %v4945_v19 = vpack.i.b16 %v5684_v59, %v6823_v41  ;;  %5096 = vmatmul.mubr.bf16.vlgmr.msra.gmra.mxu1 %v2373_v48  ;;  %v824_v37 = vrot.slane %v816_v2, %v5414_v21  ;;  %v4947_v42 = vpack.i.b16 %v5673_v20, %v2189_v9  ;;  %v2398_v30 = vrot.slane %v2376_v56, %v5414_v21 }
  0xd7   :  { %v817_v62 = vcombine.low %v6824_v7, %v815_v8  ;;  %v4946_v1 = vpack.i.b16 %v5717_v16, %v6825_v10  ;;  %v2405_v46 = vrot.slane %v2377_v58, %v5414_v21  ;;  %v6037_v28 = vrot.slane %v1991_v53, %v5414_v21  ;;  %5099 = vmatprep.mubr.msk.bf16.mxu1 %vm5196_vm0, %v6820_v44 }
  0xd8   :  { %v6041_v32 = vsel %vm967_vm3, %v5433_v63, %v1742_v54  ;;  %v2375_v20 = vcombine.low %v4947_v42, %v5746_v14  ;;  %v2215_v58 = vunpack.i.h.s16 %v5827_v18  ;;  %v6826_v53 = vunpack.i.h.s16 %v5771_v49 }
  0xd9   :  { %v831_v59 = vrot.slane %v817_v62, %v5414_v21  ;;  %v2374_v16 = vcombine.low %v4945_v19, %v4946_v1  ;;  %5064 = vmatmul.mubr.msk.bf16.gmra.mxu0 %vm967_vm3, %v783_v11  ;;  %v2407_v56 = vcombine.low %v2398_v30, %v2405_v46  ;;  %v2014_v63 = vrot.slane %v1992_v31, %v5414_v21 }
  0xda   :  { %v4951_v34 = vpack.i.b16 %v5792_v57, %v6826_v53  ;;  %v2021_v36 = vrot.slane %v1993_v33, %v5414_v21  ;;  %5067 = vmatprep.mubr.msk.bf16.mxu0 %vm5196_vm0, %v6820_v44  ;;  %v6827_v22 = vunpack.i.h.s16 %v5792_v57  ;;  %v2391_v9 = vrot.slane %v2375_v20, %v5414_v21 }
  0xdb   :  { %v832_v6 = vcombine.low %v824_v37, %v831_v59  ;;  %v2384_v14 = vrot.slane %v2374_v16, %v5414_v21  ;;  %v6828_v49 = vunpack.i.h.s16 %v5814_v17  ;;  %v4954_v31 = vpack.i.b16 %v5780_v23, %v2215_v58 }
  0xdc   :  { %v4952_v8 = vpack.i.b16 %v5814_v17, %v6827_v22  ;;  %v2073_v54 = vcombine.high %v6041_v32, %v6041_v32  ;;  %v4429_v48 = vrot.slane %v5703_v61, %v5463_v40  ;;  %v2424_v57 = vcombine.low %v5972_v45, %v5980_v3 }
  0xdd   :  { %v4953_v26 = vpack.i.b16 %v5827_v18, %v6828_v49  ;;  %v2023_v41 = vcombine.high %v6037_v28, %v6037_v28  ;;  %v2406_v19 = vcombine.low %v2384_v14, %v2391_v9  ;;  %v2421_v17 = vrot.slane %v2407_v56, %v5414_v21 }
  0xde   :  { %v2425_v2 = vcombine.low %v4951_v34, %v4952_v8  ;;  %v4972_v18 = vcombine.high %v6013_v60, %v2014_v63  ;;  %v2475_v11 = vcombine.low %v6037_v28, %v2021_v36  ;;  %v4422_v7 = vrot.slane %v5600_v38, %v5463_v40 }
  0xdf   :  { %v2426_v33 = vcombine.low %v4953_v26, %v4954_v31  ;;  %v2440_v61 = vrot.slane %v2424_v57, %v5414_v21  ;;  %v2245_v62 = vunpack.i.h.s16 %v5892_v50  ;;  %v2414_v45 = vrot.slane %v2406_v19, %v5414_v21  ;;  %v6833_v31 = vld [vmem:[#allocation10_spill] sm:$0xff]  ;;  %v6835_v57 = vld [vmem:[#allocation11_spill] sm:$0xff] }
  0xe0   :  { %v2433_v3 = vrot.slane %v5982_v27, %v5414_v21  ;;  %v2080_v1 = vrot.slane %v6041_v32, %v5414_v21  ;;  %v2087_v37 = vrot.slane %v2073_v54, %v5414_v21  ;;  %v4431_v42 = vcombine.high %v4422_v7, %v4429_v48 }
  0xe1   :  { %v2454_v10 = vrot.slane %v2426_v33, %v5414_v21  ;;  %v2447_v30 = vrot.slane %v2425_v2, %v5414_v21  ;;  %v2071_v38 = vcombine.high %v5856_v13, %v5856_v13  ;;  %5068 = vmatmul.mubr.msk.bf16.gmra.mxu0 %vm967_vm3, %v832_v6  ;;  %v2422_v50 = vcombine.low %v2414_v45, %v2421_v17 }
  0xe2   :  { %v2455_v46 = vcombine.low %v2433_v3, %v2440_v61  ;;  %v6829_v28 = vunpack.i.h.s16 %v5810_v52  ;;  %v6830_v27 = vcombine.high %v5780_v23, %v5780_v23  ;;  %v6100_v16 = vrot.slane %v2137_v12, %v5414_v21  ;;  %5004 = vmatprep.mubr.msk.bf16.mxu0 %vm150_vm1, %v4431_v42 }
  0xe3   :  { %v2473_v20 = vcombine.low %v6013_v60, %v2014_v63  ;;  %v6831_v56 = vrot.slane %v5371_v5, 2  ;;  %v2456_v52 = vcombine.low %v2447_v30, %v2454_v10  ;;  %v4957_v53 = vpack.i.b16 %v5852_v43, %v2023_v41  ;;  %5100 = vmatmul.mubr.bf16.gmra.mxu1 %v2422_v50 }
  0xe4   :  { %v4956_v59 = vpack.i.b16 %v6830_v27, %v6829_v28  ;;  %v4354_v23 = vrot.slane %v6021_v0, %v5463_v40  ;;  %v4963_v34 = vpack.i.b16 %v2071_v38, %v2245_v62  ;;  %v2241_v12 = vunpack.i.h.s16 %v5922_v39  ;;  %5103 = vmatprep.mubr.msk.bf16.mxu1 %vm5196_vm0, %v6820_v44  ;;  %v6838_v38 = vld [vmem:[#allocation5_spill] sm:$0xff] }
  0xe5   :  { %v6106_v58 = vcombine.high %v5954_v25, %v6831_v56  ;;  %v2088_v36 = vcombine.high %v2080_v1, %v2080_v1  ;;  %v6114_v60 = vrot.slane %v2080_v1, %v5414_v21  ;;  %v2103_v5 = vrot.slane %v2087_v37, %v5414_v21  ;;  %v6837_v1 = vld [vmem:[#allocation12_spill] sm:$0xff] }
  0xe6   :  { %v4447_v25 = vrot.slane %v5976_v55, %v5463_v40  ;;  %v2463_v63 = vrot.slane %v2455_v46, %v5414_v21  ;;  %v2472_v0 = vcombine.low %v5866_v24, %v4956_v59  ;;  %v2496_v6 = vrot.slane %v4972_v18, %v5414_v21 }
  0xe7   :  { %v2503_v22 = vrot.slane %v2475_v11, %v5414_v21  ;;  %v4430_v8 = vcombine.low %v4422_v7, %v4429_v48  ;;  %v4440_v14 = vrot.slane %v5725_v4, %v5463_v40  ;;  %v2470_v9 = vrot.slane %v2456_v52, %v5414_v21 }
  0xe8   :  { %v2489_v49 = vrot.slane %v2473_v20, %v5414_v21  ;;  %v6832_v26 = vunpack.i.h.s16 %v5852_v43  ;;  %v6834_v54 = vunpack.i.h.s16 %v6833_v31  ;;  %v6836_v2 = vunpack.i.h.s16 %v6835_v57 }
  0xe9   :  { %v4961_v48 = vpack.i.b16 %v5856_v13, %v2241_v12  ;;  %v4362_v19 = vcombine.high %v4354_v23, %v4354_v23  ;;  %v2089_v4 = vcombine.high %v2087_v37, %v2087_v37  ;;  %v2119_v17 = vcombine.high %v2103_v5, %v2103_v5  ;;  %4639 = vmatmul.mubr.bf16.vlgmr.msra.gmra.mxu0 %v4430_v8 }
  0xea   :  { %v4958_v55 = vpack.i.b16 %v6833_v31, %v6832_v26  ;;  %v4959_v24 = vpack.i.b16 %v6835_v57, %v6834_v54  ;;  %v4960_v41 = vpack.i.b16 %v5922_v39, %v6836_v2  ;;  %v4449_v33 = vcombine.high %v4440_v14, %v4447_v25 }
  0xeb   :  { %v2471_v18 = vcombine.low %v2463_v63, %v2470_v9  ;;  %v2482_v43 = vrot.slane %v2472_v0, %v5414_v21  ;;  %v2505_v11 = vcombine.low %v2496_v6, %v2503_v22  ;;  %v6142_v61 = vcombine.high %v5989_v29, %v5989_v29 }
  0xec   :  { %v2521_v7 = vcombine.low %v4957_v53, %v4958_v55  ;;  %v2261_v62 = vunpack.i.h.s16 %v5989_v29  ;;  %v2263_v39 = vunpack.i.h.s16 %v5998_v47  ;;  %v2110_v13 = vrot.slane %v2088_v36, %v5414_v21  ;;  %5005 = vmatprep.mubr.msk.bf16.mxu0 %vm150_vm1, %v4449_v33  ;;  %v6840_v53 = vld [vmem:[#allocation7_spill] sm:$0xff] }
  0xed   :  { %v2524_v45 = vcombine.low %v4963_v34, %v6114_v60  ;;  %5104 = vmatmul.mubr.bf16.gmra.mxu1 %v2471_v18  ;;  %v2504_v3 = vcombine.low %v2482_v43, %v2489_v49  ;;  %v2522_v10 = vcombine.low %v4959_v24, %v4960_v41  ;;  %v2523_v37 = vcombine.low %v4961_v48, %v6837_v1  ;;  %v6841_v49 = vld [vmem:[#allocation9_spill] sm:$0xff]  ;;  %v6843_v41 = vld [vmem:[#allocation6_spill] sm:$0xff] }
  0xee   :  { %v4361_v42 = vrot.slane %v6106_v58, %v5463_v40  ;;  %v4468_v30 = vcombine.low %v4354_v23, %v4362_v19  ;;  %v6839_v50 = vrot.slane %v6838_v38, 2  ;;  %5107 = vmatprep.mubr.msk.bf16.mxu1 %vm5196_vm0, %v6820_v44  ;;  %v4458_v28 = vrot.slane %v5950_v35, %v5463_v40 }
  0xef   :  { %v2117_v27 = vrot.slane %v2089_v4, %v5414_v21  ;;  %v4964_v59 = vpack.i.b16 %v5989_v29, %v2119_v17  ;;  %v2519_v20 = vrot.slane %v2505_v11, %v5414_v21  ;;  %v2531_v56 = vrot.slane %v2521_v7, %v5414_v21 }
  0xf0   :  { %v4380_v46 = vcombine.low %v6041_v32, %v6839_v50  ;;  %v2120_v58 = vcombine.high %v2110_v13, %v2110_v13  ;;  %v4448_v52 = vcombine.low %v4440_v14, %v4447_v25  ;;  %v4465_v23 = vrot.slane %v6840_v53, %v5463_v40 }
  0xf1   :  { %v4966_v34 = vpack.i.b16 %v6142_v61, %v2263_v39  ;;  %v2512_v12 = vrot.slane %v2504_v3, %v5414_v21  ;;  %v2538_v36 = vrot.slane %v2522_v10, %v5414_v21  ;;  %v2545_v35 = vrot.slane %v2523_v37, %v5414_v21 }
  0xf2   :  { %v2552_v63 = vrot.slane %v2524_v45, %v5414_v21  ;;  %v2118_v29 = vcombine.high %v6114_v60, %v6114_v60  ;;  %v4388_v0 = vrot.slane %v4380_v46, %v5463_v40  ;;  %v4467_v6 = vcombine.high %v4458_v28, %v4465_v23  ;;  %4647 = vmatmul.mubr.bf16.gmra.mxu0 %v4448_v52  ;;  %v6842_v60 = vld [vmem:[#allocation8_spill] sm:$0xff] }
  0xf3   :  { %v4965_v25 = vpack.i.b16 %v5998_v47, %v2261_v62  ;;  %v2520_v22 = vcombine.low %v2512_v12, %v2519_v20  ;;  %v2553_v8 = vcombine.low %v2531_v56, %v2538_v36  ;;  %v2572_v14 = vcombine.low %v2117_v27, %v4964_v59 }
  0xf4   :  { %v2168_v9 = vcombine.high %v5998_v47, %v5998_v47  ;;  %v4469_v26 = vcombine.low %v4361_v42, %v6841_v49  ;;  %v2571_v31 = vcombine.low %v2120_v58, %v2103_v5  ;;  %5006 = vmatprep.mubr.msk.bf16.mxu0 %vm150_vm1, %v4467_v6  ;;  %v4378_v54 = vrot.slane %v6842_v60, %v5463_v40 }
  0xf5   :  { %v2573_v55 = vcombine.low %v4965_v25, %v4966_v34  ;;  %v4379_v57 = vcombine.high %v6841_v49, %v6841_v49  ;;  %v2151_v24 = vrot.slane %v5963_v15, %v5414_v21  ;;  %5108 = vmatmul.mubr.bf16.gmra.mxu1 %v2520_v22  ;;  %v2554_v2 = vcombine.low %v2545_v35, %v2552_v63 }
  0xf6   :  { %v6844_v48 = vrot.slane %v6843_v41, 2  ;;  %v2570_v19 = vcombine.low %v2110_v13, %v2118_v29  ;;  %v4396_v5 = vcombine.high %v4388_v0, %v4388_v0  ;;  %5111 = vmatprep.mubr.msk.bf16.mxu1 %vm5196_vm0, %v6820_v44  ;;  %v4476_v4 = vrot.slane %v4468_v30, %v5463_v40 }
  0xf7   :  { %v2271_v17 = vunpack.i.h.s16 %v6100_v16  ;;  %v2561_v33 = vrot.slane %v2553_v8, %v5414_v21  ;;  %v2594_v18 = vrot.slane %v2572_v14, %v5414_v21  ;;  %v2267_v15 = vunpack.i.h.s16 %v2168_v9 }
  0xf8   :  { %v4397_v47 = vcombine.low %v5917_v51, %v6844_v48  ;;  %v4466_v43 = vcombine.low %v4458_v28, %v4465_v23  ;;  %v4483_v11 = vrot.slane %v4469_v26, %v5463_v40  ;;  %v2587_v7 = vrot.slane %v2571_v31, %v5414_v21 }
  0xf9   :  { %v2601_v62 = vrot.slane %v2573_v55, %v5414_v21  ;;  %v2568_v39 = vrot.slane %v2554_v2, %v5414_v21  ;;  %v2167_v13 = vcombine.high %v2151_v24, %v2151_v24  ;;  %v2265_v45 = vunpack.i.h.s16 %v6142_v61 }
  0xfa   :  { %v2269_v3 = vunpack.i.h.s16 %v2151_v24  ;;  %v6845_v10 = vmov %v6839_v50  ;;  %v4487_v37 = vcombine.low %v4388_v0, %v4396_v5  ;;  %v4485_v42 = vcombine.high %v4476_v4, %v4483_v11  ;;  %4655 = vmatmul.mubr.bf16.gmra.mxu0 %v4466_v43 }
  0xfb   :  { %v4381_v1 = vcombine.high %v6041_v32, %v6845_v10  ;;  %v2580_v30 = vrot.slane %v2570_v19, %v5414_v21  ;;  %v2569_v50 = vcombine.low %v2561_v33, %v2568_v39  ;;  %v2603_v46 = vcombine.low %v2594_v18, %v2601_v62 }
  0xfc   :  { %v4968_v28 = vpack.i.b16 %v2151_v24, %v2267_v15  ;;  %v4970_v27 = vpack.i.b16 %v2167_v13, %v2271_v17  ;;  %v4486_v59 = vcombine.low %v4379_v57, %v4378_v54  ;;  %v4405_v20 = vrot.slane %v4397_v47, %v5463_v40  ;;  %5007 = vmatprep.mubr.msk.bf16.mxu0 %vm150_vm1, %v4485_v42 }
  0xfd   :  { %5112 = vmatmul.mubr.bf16.gmra.mxu1 %v2569_v50  ;;  %v2602_v61 = vcombine.low %v2580_v30, %v2587_v7  ;;  %v4967_v56 = vpack.i.b16 %v2168_v9, %v2265_v45  ;;  %v4969_v38 = vpack.i.b16 %v6100_v16, %v2269_v3  ;;  %v6846_v32 = vmov %v6844_v48 }
  0xfe   :  { %v4398_v58 = vcombine.high %v5917_v51, %v6846_v32  ;;  %v4395_v52 = vrot.slane %v4381_v1, %v5463_v40  ;;  %5115 = vmatprep.mubr.msk.bf16.mxu1 %vm5196_vm0, %v6820_v44  ;;  %v4501_v53 = vrot.slane %v4487_v37, %v5463_v40  ;;  %v2617_v23 = vrot.slane %v2603_v46, %v5414_v21 }
  0xff   :  { %v2619_v34 = vcombine.low %v4967_v56, %v4968_v28  ;;  %v2620_v12 = vcombine.low %v4969_v38, %v4970_v27  ;;  %v4413_v36 = vcombine.high %v4405_v20, %v4405_v20  ;;  %v4494_v35 = vrot.slane %v4486_v59, %v5463_v40 }
 0x100   :  { %v4484_v63 = vcombine.low %v4476_v4, %v4483_v11  ;;  %v2610_v16 = vrot.slane %v2602_v61, %v5414_v21  ;;  %v4412_v29 = vrot.slane %v4398_v58, %v5463_v40  ;;  %v4504_v51 = vcombine.low %v4395_v52, %v4405_v20 }
 0x101   :  { %v4503_v0 = vcombine.high %v4494_v35, %v4501_v53  ;;  %v2627_v25 = vrot.slane %v2619_v34, %v5414_v21  ;;  %v2634_v22 = vrot.slane %v2620_v12, %v5414_v21  ;;  %v4502_v26 = vcombine.low %v4494_v35, %v4501_v53 }
 0x102   :  { %4663 = vmatmul.mubr.bf16.gmra.mxu0 %v4484_v63  ;;  %v2618_v6 = vcombine.low %v2610_v16, %v2617_v23  ;;  %v4505_v8 = vcombine.low %v4413_v36, %v4412_v29  ;;  %v4512_v14 = vrot.slane %v4504_v51, %v5463_v40 }
 0x103   :  { %5008 = vmatprep.mubr.msk.bf16.mxu0 %vm150_vm1, %v4503_v0  ;;  %v2635_v9 = vcombine.low %v2627_v25, %v2634_v22 }
 0x104   :  { %v4519_v49 = vrot.slane %v4505_v8, %v5463_v40 }
 0x105   :  { %5116 = vmatmul.mubr.bf16.gmra.mxu1 %v2618_v6  ;;  %v2642_v55 = vrot.slane %v2635_v9, %v5414_v21 }
 0x106   :  { %5119 = vmatprep.mubr.msk.bf16.mxu1 %vm5196_vm0, %v6820_v44  ;;  %v4521_v31 = vcombine.high %v4512_v14, %v4519_v49  ;;  %v4520_v60 = vcombine.low %v4512_v14, %v4519_v49  ;;  %vm4908_vm0 = vcmask 195584  }
 0x10a   :  { %4671 = vmatmul.mubr.bf16.gmra.mxu0 %v4502_v26 }
 0x10b   :  { %5009 = vmatprep.mubr.msk.bf16.mxu0 %vm150_vm1, %v4521_v31 }
 0x10d   :  { %5120 = vmatmul.mubr.bf16.gmra.mxu1 %v2642_v55 }
 0x112   :  { %4679 = vmatmul.mubr.bf16.gmra.mxu0 %v4520_v60 }
 0x15e   :  { %v6225_v54 = vpop.f32.mrf.mxu1 }
 0x15f   :  { %v1262_v44 = vcombine.high %v6225_v54, %v6225_v54 }
 0x160   :  { %v5073_v57 = vpop.f32.mrf.mxu1 }
 0x161   :  { %v1276_v24 = vrot.slane %v1262_v44, %v5463_v40 }
 0x162   :  { %v1066_v2 = vpop.f32.mrf.mxu1 }
 0x163   :  { %v1278_v41 = vcombine.high %v1276_v24, %v1276_v24  ;;  %v1279_v48 = vcombine.high %v1066_v2, %v1066_v2  ;;  %v1286_v47 = vrot.slane %v1066_v2, %v5463_v40 }
 0x164   :  { %v5074_v19 = vpop.f32.mrf.mxu1 }
 0x165   :  { %v1529_v5 = vcombine.low %v1276_v24, %v1278_v41  ;;  %v1023_v4 = vpop.f32.mrf.mxu0  ;;  %v1294_v17 = vcombine.high %v1286_v47, %v1286_v47  ;;  %v1293_v15 = vrot.slane %v1279_v48, %v5463_v40 }
 0x166   :  { %v1092_v33 = vcombine.high %v1023_v4, %v1023_v4  ;;  %v1099_v18 = vrot.slane %v1023_v4, %v5463_v40 }
 0x167   :  { %v1530_v43 = vcombine.low %v1286_v47, %v1294_v17  ;;  %v5053_v11 = vpop.f32.mrf.mxu0  ;;  %v1537_v39 = vrot.slane %v1529_v5, %v5463_v40  ;;  %v1295_v42 = vcombine.high %v1293_v15, %v1293_v15 }
 0x168   :  { %v1106_v7 = vrot.slane %v1092_v33, %v5463_v40  ;;  %v1107_v62 = vcombine.high %v1099_v18, %v1099_v18 }
 0x169   :  { %v1544_v13 = vrot.slane %v1530_v43, %v5463_v40  ;;  %v1026_v45 = vpop.f32.mrf.mxu0  ;;  %v1546_v56 = vcombine.low %v1293_v15, %v1295_v42 }
 0x16a   :  { %v1108_v3 = vcombine.high %v1106_v7, %v1106_v7  ;;  %v1331_v10 = vcombine.low %v1099_v18, %v1107_v62  ;;  %v1109_v1 = vcombine.high %v1026_v45, %v1026_v45  ;;  %v1116_v37 = vrot.slane %v1026_v45, %v5463_v40 }
 0x16b   :  { %v1545_v30 = vcombine.low %v1537_v39, %v1544_v13  ;;  %v5054_v50 = vpop.f32.mrf.mxu0  ;;  %v1553_v12 = vrot.slane %v1546_v56, %v5463_v40 }
 0x16c   :  { %v1332_v46 = vcombine.low %v1106_v7, %v1108_v3  ;;  %v1339_v28 = vrot.slane %v1331_v10, %v5463_v40  ;;  %v1123_v27 = vrot.slane %v1109_v1, %v5463_v40  ;;  %v1124_v59 = vcombine.high %v1116_v37, %v1116_v37 }
 0x16d   :  { %v1667_v31 = vsel %vm1611_vm5, %v1545_v30, -inf }
 0x16e   :  { %v1346_v20 = vrot.slane %v1332_v46, %v5463_v40  ;;  %v1348_v61 = vcombine.low %v1116_v37, %v1124_v59  ;;  %v1362_v58 = vrot.slane %v1123_v27, %v5463_v40  ;;  %v1125_v5 = vcombine.high %v1123_v27, %v1123_v27 }
 0x170   :  { %v1347_v38 = vcombine.low %v1339_v28, %v1346_v20  ;;  %v1355_v32 = vrot.slane %v1348_v61, %v5463_v40 }
 0x172   :  { %v1363_v52 = vcombine.low %v1355_v32, %v1362_v58  ;;  %v1071_v53 = vpop.f32.mrf.mxu1  ;;  %v1612_v36 = vsel %vm1611_vm5, %v1347_v38, -inf }
 0x173   :  { %v1296_v23 = vcombine.high %v1071_v53, %v1071_v53  ;;  %v1303_v34 = vrot.slane %v1071_v53, %v5463_v40 }
 0x174   :  { %v1614_v35 = vsel %vm1613_vm4, %v1363_v52, -inf  ;;  %v5077_v63 = vpop.f32.mrf.mxu1 }
 0x175   :  { %v1615_v16 = vmax.f32 %v1612_v36, %v1614_v35  ;;  %v1310_v29 = vrot.slane %v1296_v23, %v5463_v40  ;;  %v1311_v51 = vcombine.high %v1303_v34, %v1303_v34  ;;  %v1560_v0 = vrot.slane %v1303_v34, %v5463_v40 }
 0x176   :  { %v1074_v6 = vpop.f32.mrf.mxu1 }
 0x177   :  { %v1561_v25 = vcombine.low %v1553_v12, %v1560_v0  ;;  %v1312_v22 = vcombine.high %v1310_v29, %v1310_v29  ;;  %v1562_v8 = vcombine.low %v1311_v51, %v1310_v29  ;;  %v1313_v14 = vcombine.high %v1074_v6, %v1074_v6 }
 0x178   :  { %v1320_v9 = vrot.slane %v1074_v6, %v5463_v40  ;;  %v5078_v49 = vpop.f32.mrf.mxu1  ;;  %v1616_v26 = vrot.slane %v1615_v16, 4  ;;  %v6270_v29 = vrot.slane %v6225_v54, %v5463_v40 }
 0x179   :  { %v1668_v55 = vsel %vm1613_vm4, %v1561_v25, -inf  ;;  %v1327_v44 = vrot.slane %v1313_v14, %v5463_v40  ;;  %v1570_v2 = vrot.slane %v1562_v8, %v5463_v40  ;;  %v6275_v25 = vld [vmem:[%s6792_s4] ss:$0 sm:$0xff] }
 0x17a   :  { %v1669_v60 = vmax.f32 %v1667_v31, %v1668_v55  ;;  %v1328_v57 = vcombine.high %v1320_v9, %v1320_v9  ;;  %v1563_v24 = vcombine.low %v1312_v22, %v1320_v9  ;;  %v1617_v19 = vmax.f32 %v1615_v16, %v1616_v26 }
 0x17b   :  { %v1329_v41 = vcombine.high %v1327_v44, %v1327_v44  ;;  %v1277_v9 = vcombine.high %v6270_v29, %v6270_v29 }
 0x17c   :  { %v1577_v48 = vrot.slane %v1563_v24, %v5463_v40  ;;  %v1579_v47 = vcombine.low %v1328_v57, %v1327_v44  ;;  %v1618_v62 = vrot.slane %v1617_v19, 2  ;;  %v1670_v37 = vrot.slane %v1669_v60, 4 }
 0x17d   :  { %v1031_v4 = vpop.f32.mrf.mxu0  ;;  %v1593_v18 = vrot.slane %v1329_v41, %v5463_v40 }
 0x17e   :  { %v1578_v17 = vcombine.low %v1570_v2, %v1577_v48  ;;  %v1586_v33 = vrot.slane %v1579_v47, %v5463_v40  ;;  %v1126_v15 = vcombine.high %v1031_v4, %v1031_v4  ;;  %v1133_v43 = vrot.slane %v1031_v4, %v5463_v40 }
 0x17f   :  { %v5057_v11 = vpop.f32.mrf.mxu0  ;;  %v1619_v27 = vmax.f32 %v1617_v19, %v1618_v62  ;;  %v1671_v38 = vmax.f32 %v1669_v60, %v1670_v37  ;;  %v6285_v47 = vrot.slane %v1277_v9, %v5463_v40 }
 0x180   :  { %v1594_v7 = vcombine.low %v1586_v33, %v1593_v18  ;;  %v1140_v39 = vrot.slane %v1126_v15, %v5463_v40  ;;  %v1141_v13 = vcombine.high %v1133_v43, %v1133_v43  ;;  %v1364_v45 = vcombine.low %v1125_v5, %v1133_v43 }
 0x181   :  { %v1676_v3 = vsel %vm1611_vm5, %v1578_v17, -inf  ;;  %v1034_v1 = vpop.f32.mrf.mxu0  ;;  %v1620_v23 = vrot.slane %v1619_v27, 1  ;;  %v1672_v36 = vrot.slane %v1671_v38, 2 }
 0x182   :  { %v1677_v10 = vsel %vm1613_vm4, %v1594_v7, -inf  ;;  %v1365_v42 = vcombine.low %v1141_v13, %v1140_v39  ;;  %v1142_v50 = vcombine.high %v1140_v39, %v1140_v39  ;;  %v1150_v46 = vrot.slane %v1034_v1, %v5463_v40 }
 0x183   :  { %v1678_v30 = vmax.f32 %v1676_v3, %v1677_v10  ;;  %v5058_v28 = vpop.f32.mrf.mxu0  ;;  %v1372_v59 = vrot.slane %v1364_v45, %v5463_v40  ;;  %v1143_v58 = vcombine.high %v1034_v1, %v1034_v1  ;;  %v1621_v51 = vmax.f32 %v1619_v27, %v1620_v23 }
 0x184   :  { %v1379_v20 = vrot.slane %v1365_v42, %v5463_v40  ;;  %v1158_v61 = vcombine.high %v1150_v46, %v1150_v46  ;;  %v1381_v56 = vcombine.low %v1142_v50, %v1150_v46  ;;  %v1673_v22 = vmax.f32 %v1671_v38, %v1672_v36 }
 0x185   :  { %v1679_v34 = vrot.slane %v1678_v30, 4  ;;  %v1157_v35 = vrot.slane %v1143_v58, %v5463_v40  ;;  %v6280_v49 = vadd.f32 %v6275_v25, %v1621_v51 }
 0x186   :  { %v1380_v32 = vcombine.low %v1372_v59, %v1379_v20  ;;  %v1388_v52 = vrot.slane %v1381_v56, %v5463_v40  ;;  %v1395_v53 = vrot.slane %v1158_v61, %v5463_v40  ;;  %v1674_v44 = vrot.slane %v1673_v22, 1 }
 0x187   :  { %v1680_v0 = vmax.f32 %v1678_v30, %v1679_v34  ;;  %v1159_v8 = vcombine.high %v1157_v35, %v1157_v35  ;;  %v1697_v19 = vmax.f32 %v6280_v49, 0.0 }
 0x188   :  { %v1396_v12 = vcombine.low %v1388_v52, %v1395_v53  ;;  %v1622_v63 = vsel %vm1611_vm5, %v1380_v32, -inf  ;;  %v6292_v13 = vmax.f32 %v1673_v22, %v1674_v44 }
 0x189   :  { %v1681_v26 = vrot.slane %v1680_v0, 2  ;;  %v1397_v57 = vcombine.low %v1157_v35, %v1159_v8 }
 0x18a   :  { %v1623_v16 = vsel %vm1613_vm4, %v1396_v12, -inf }
 0x18b   :  { %v1624_v6 = vmax.f32 %v1622_v63, %v1623_v16  ;;  %v6288_v17 = vmax.f32 %v1680_v0, %v1681_v26  ;;  %v1405_v11 = vrot.slane %v1397_v57, %v5463_v40 }
 0x18d   :  { %v1625_v14 = vrot.slane %v1624_v6, 4  ;;  %v1683_v45 = vrot.slane %v6288_v17, 1 }
 0x18f   :  { %v1626_v54 = vmax.f32 %v1624_v6, %v1625_v14 }
 0x191   :  { %v1039_v31 = vpop.f32.mrf.mxu0  ;;  %v1627_v24 = vrot.slane %v1626_v54, 2 }
 0x192   :  { %v1160_v55 = vcombine.high %v1039_v31, %v1039_v31  ;;  %v1167_v60 = vrot.slane %v1039_v31, %v5463_v40 }
 0x193   :  { %v5061_v2 = vpop.f32.mrf.mxu0  ;;  %v1628_v5 = vmax.f32 %v1626_v54, %v1627_v24 }
 0x194   :  { %v1174_v41 = vrot.slane %v1160_v55, %v5463_v40  ;;  %v1175_v48 = vcombine.high %v1167_v60, %v1167_v60 }
 0x195   :  { %v1042_v4 = vpop.f32.mrf.mxu0  ;;  %v1629_v7 = vrot.slane %v1628_v5, 1 }
 0x196   :  { %v1176_v33 = vcombine.high %v1174_v41, %v1174_v41  ;;  %v1398_v18 = vcombine.low %v1167_v60, %v1175_v48  ;;  %v1177_v15 = vcombine.high %v1042_v4, %v1042_v4  ;;  %v1184_v43 = vrot.slane %v1042_v4, %v5463_v40  ;;  %v2732_v39 = vpop.f32.mrf.mxu1 }
 0x197   :  { %v5062_v62 = vpop.f32.mrf.mxu0  ;;  %v1630_v42 = vmax.f32 %v1628_v5, %v1629_v7  ;;  %v2799_v46 = vcombine.high %v2732_v39, %v2732_v39  ;;  %v2806_v28 = vrot.slane %v2732_v39, %v5414_v21 }
 0x198   :  { %v1412_v3 = vrot.slane %v1398_v18, %v5463_v40  ;;  %v1414_v10 = vcombine.low %v1174_v41, %v1176_v33  ;;  %v1191_v1 = vrot.slane %v1177_v15, %v5463_v40  ;;  %v1192_v37 = vcombine.high %v1184_v43, %v1184_v43  ;;  %v5097_v27 = vpop.f32.mrf.mxu1 }
 0x199   :  { %v1428_v30 = vrot.slane %v1184_v43, %v5463_v40  ;;  %v1047_v50 = vpop.f32.mrf.mxu0  ;;  %v1690_v38 = vadd.f32 %v6275_v25, %v1630_v42  ;;  %v2813_v53 = vrot.slane %v2799_v46, %v5414_v21  ;;  %v2814_v35 = vcombine.high %v2806_v28, %v2806_v28 }
 0x19a   :  { %v1413_v59 = vcombine.low %v1405_v11, %v1412_v3  ;;  %v1421_v20 = vrot.slane %v1414_v10, %v5463_v40  ;;  %v1430_v61 = vcombine.low %v1192_v37, %v1191_v1  ;;  %v1193_v56 = vcombine.high %v1191_v1, %v1191_v1  ;;  %v2735_v23 = vpop.f32.mrf.mxu1 }
 0x19b   :  { %v1194_v32 = vcombine.high %v1047_v50, %v1047_v50  ;;  %v1201_v58 = vrot.slane %v1047_v50, %v5463_v40  ;;  %v5065_v52 = vpop.f32.mrf.mxu0  ;;  %v1698_v63 = vmax.f32 %v1690_v38, 0.0  ;;  %v2815_v14 = vcombine.high %v2813_v53, %v2813_v53 }
 0x19c   :  { %v1429_v34 = vcombine.low %v1421_v20, %v1428_v30  ;;  %v1438_v12 = vrot.slane %v1430_v61, %v5463_v40  ;;  %v1631_v36 = vsel %vm1611_vm5, %v1413_v59, -inf  ;;  %v5098_v22 = vpop.f32.mrf.mxu1  ;;  %v2822_v9 = vrot.slane %v2806_v28, %v5414_v21 }
 0x19d   :  { %v1208_v16 = vrot.slane %v1194_v32, %v5463_v40  ;;  %v1209_v51 = vcombine.high %v1201_v58, %v1201_v58  ;;  %v1431_v0 = vcombine.low %v1193_v56, %v1201_v58  ;;  %v1050_v6 = vpop.f32.mrf.mxu0  ;;  %v2829_v26 = vrot.slane %v2813_v53, %v5414_v21 }
 0x19e   :  { %v1632_v8 = vsel %vm1613_vm4, %v1429_v34, -inf  ;;  %v6309_v54 = vrot.slane %v1698_v63, 7  ;;  %v2836_v24 = vrot.slane %v2814_v35, %v5414_v21  ;;  %v2843_v2 = vrot.slane %v2815_v14, %v5414_v21 }
 0x19f   :  { %v1633_v31 = vmax.f32 %v1631_v36, %v1632_v8  ;;  %v1210_v55 = vcombine.high %v1208_v16, %v1208_v16  ;;  %v1445_v60 = vrot.slane %v1431_v0, %v5463_v40  ;;  %v5066_v44 = vpop.f32.mrf.mxu0  ;;  %v1447_v57 = vcombine.low %v1209_v51, %v1208_v16 }
 0x1a0   :  { %v1211_v41 = vcombine.high %v1050_v6, %v1050_v6  ;;  %v1218_v33 = vrot.slane %v1050_v6, %v5463_v40  ;;  %v3437_v43 = vcombine.low %v2822_v9, %v2836_v24  ;;  %v4981_v11 = vcombine.high %v2822_v9, %v2836_v24 }
 0x1a1   :  { %v1634_v48 = vrot.slane %v1633_v31, 4  ;;  %v1446_v5 = vcombine.low %v1438_v12, %v1445_v60  ;;  %v1461_v4 = vrot.slane %v1210_v55, %v5463_v40  ;;  %v6316_v18 = vpop.f32.mrf.mxu0  ;;  %v1454_v15 = vrot.slane %v1447_v57, %v5463_v40 }
 0x1a2   :  { %v3439_v7 = vcombine.low %v2829_v26, %v2843_v2  ;;  %v4982_v3 = vcombine.high %v2829_v26, %v2843_v2  ;;  %v1225_v10 = vrot.slane %v1211_v41, %v5463_v40  ;;  %v3447_v30 = vrot.slane %v3437_v43, %v5414_v21 }
 0x1a3   :  { %v1635_v62 = vmax.f32 %v1633_v31, %v1634_v48  ;;  %v1640_v39 = vsel %vm1611_vm5, %v1446_v5, -inf  ;;  %v5069_v1 = vpop.f32.mrf.mxu0  ;;  %v6321_v37 = vpop.f32.mrf.mxu1  ;;  %v1462_v42 = vcombine.low %v1454_v15, %v1461_v4  ;;  %v3454_v50 = vrot.slane %v4981_v11, %v5414_v21 }
 0x1a4   :  { %v3461_v46 = vrot.slane %v3439_v7, %v5414_v21  ;;  %v3468_v27 = vrot.slane %v4982_v3, %v5414_v21  ;;  %v1226_v59 = vcombine.high %v1218_v33, %v1218_v33  ;;  %v1227_v20 = vcombine.high %v1225_v10, %v1225_v10 }
 0x1a5   :  { %v1636_v28 = vrot.slane %v1635_v62, 2  ;;  %v6327_v61 = vpop.f32.mrf.mxu0  ;;  %v5101_v56 = vpop.f32.mrf.mxu1  ;;  %v1641_v38 = vsel %vm1613_vm4, %v1462_v42, -inf  ;;  %v3469_v32 = vcombine.low %v3447_v30, %v3454_v50  ;;  %v2848_v58 = vcombine.high %v2735_v23, %v2735_v23 }
 0x1a6   :  { %v2855_v52 = vrot.slane %v2735_v23, %v5414_v21  ;;  %v1642_v34 = vmax.f32 %v1640_v39, %v1641_v38  ;;  %v3470_v12 = vcombine.low %v3461_v46, %v3468_v27  ;;  %v1463_v36 = vcombine.low %v1218_v33, %v1226_v59 }
 0x1a7   :  { %v1637_v53 = vmax.f32 %v1635_v62, %v1636_v28  ;;  %v5070_v35 = vpop.f32.mrf.mxu0  ;;  %v6331_v63 = vpop.f32.mrf.mxu1  ;;  %v3477_v16 = vrot.slane %v3469_v32, %v5414_v21  ;;  %v1464_v51 = vcombine.low %v1225_v10, %v1227_v20  ;;  %v2862_v0 = vrot.slane %v2848_v58, %v5414_v21 }
 0x1a8   :  { %v2863_v6 = vcombine.high %v2855_v52, %v2855_v52  ;;  %v1643_v8 = vrot.slane %v1642_v34, 4  ;;  %v3484_v14 = vrot.slane %v3470_v12, %v5414_v21  ;;  %v1471_v9 = vrot.slane %v1463_v36, %v5463_v40 }
 0x1a9   :  { %v1638_v22 = vrot.slane %v1637_v53, 1  ;;  %v5102_v23 = vpop.f32.mrf.mxu1  ;;  %v6337_v26 = vpop.f32.mrf.mxu0  ;;  %v1478_v31 = vrot.slane %v1464_v51, %v5463_v40  ;;  %v2864_v55 = vcombine.high %v2862_v0, %v2862_v0  ;;  %v2871_v60 = vrot.slane %v2855_v52, %v5414_v21 }
 0x1aa   :  { %v2878_v44 = vrot.slane %v2862_v0, %v5414_v21  ;;  %v1644_v24 = vmax.f32 %v1642_v34, %v1643_v8  ;;  %v3485_v2 = vcombine.low %v3477_v16, %v3484_v14  ;;  %v2885_v41 = vrot.slane %v2863_v6, %v5414_v21 }
 0x1ab   :  { %v1639_v57 = vmax.f32 %v1637_v53, %v1638_v22  ;;  %v4642_v5 = vpop.f32.mrf.mxu0  ;;  %v1479_v4 = vcombine.low %v1471_v9, %v1478_v31  ;;  %v2892_v33 = vrot.slane %v2864_v55, %v5414_v21  ;;  %v1228_v56 = vcombine.high %v6316_v18, %v6316_v18 }
 0x1ac   :  { %v2894_v15 = vcombine.high %v2878_v44, %v2878_v44  ;;  %v3508_v43 = vrot.slane %v2878_v44, %v5414_v21  ;;  %v1645_v7 = vrot.slane %v1644_v24, 2  ;;  %v3486_v62 = vcombine.low %v2871_v60, %v2885_v41 }
 0x1ad   :  { %v6343_v48 = vpop.f32.mrf.mxu1  ;;  %v1691_v11 = vadd.f32 %v6275_v25, %v1639_v57  ;;  %v4983_v39 = vcombine.high %v2871_v60, %v2885_v41  ;;  %v6348_v10 = vpop.f32.mrf.mxu0  ;;  %v6351_v1 = vsel %vm1611_vm5, %v1479_v4, -inf  ;;  %v4157_v50 = vsel %vm1611_vm5, %v3485_v2, -inf }
 0x1ae   :  { %v3523_v42 = vrot.slane %v3508_v43, %v5414_v21  ;;  %v3525_v30 = vcombine.low %v2892_v33, %v2894_v15  ;;  %v1646_v28 = vmax.f32 %v1644_v24, %v1645_v7  ;;  %v3494_v27 = vrot.slane %v3486_v62, %v5414_v21 }
 0x1af   :  { %v5105_v3 = vpop.f32.mrf.mxu1  ;;  %v1699_v46 = vmax.f32 %v1691_v11, 0.0  ;;  %v3501_v25 = vrot.slane %v4983_v39, %v5414_v21  ;;  %v4645_v20 = vpop.f32.mrf.mxu0  ;;  %v1235_v38 = vrot.slane %v6316_v18, %v5463_v40  ;;  %v2896_v32 = vcombine.high %v2892_v33, %v2892_v33 }
 0x1b0   :  { %v2897_v58 = vcombine.high %v6321_v37, %v6321_v37  ;;  %v1647_v53 = vrot.slane %v1646_v28, 1  ;;  %v2904_v12 = vrot.slane %v6321_v37, %v5414_v21  ;;  %v1242_v16 = vrot.slane %v1228_v56, %v5463_v40 }
 0x1b1   :  { %v6357_v59 = vpop.f32.mrf.mxu1  ;;  %v6365_v52 = vrot.slane %v1699_v46, 6  ;;  %v3509_v34 = vcombine.low %v3494_v27, %v3501_v25  ;;  %v1243_v51 = vcombine.high %v1235_v38, %v1235_v38  ;;  %v3535_v18 = vrot.slane %v3525_v30, %v5414_v21 }
 0x1b2   :  { %v6369_v35 = vpop.f32.mrf.mxu0  ;;  %v2911_v0 = vrot.slane %v2897_v58, %v5414_v21  ;;  %v6374_v6 = vmax.f32 %v1646_v28, %v1647_v53  ;;  %v2912_v8 = vcombine.high %v2904_v12, %v2904_v12  ;;  %v2920_v14 = vrot.slane %v2904_v12, %v5414_v21 }
 0x1b3   :  { %v5106_v36 = vpop.f32.mrf.mxu1  ;;  %v3516_v22 = vrot.slane %v3509_v34, %v5414_v21  ;;  %v1480_v23 = vcombine.low %v1235_v38, %v1243_v51  ;;  %v1494_v31 = vrot.slane %v1242_v16, %v5463_v40  ;;  %v1244_v43 = vcombine.high %v1242_v16, %v1242_v16 }
 0x1b4   :  { %v4650_v37 = vpop.f32.mrf.mxu0  ;;  %v2913_v55 = vcombine.high %v2911_v0, %v2911_v0  ;;  %v2927_v60 = vrot.slane %v2911_v0, %v5414_v21  ;;  %v2934_v57 = vrot.slane %v2912_v8, %v5414_v21  ;;  %v2942_v24 = vcombine.high %v2920_v14, %v2920_v14 }
 0x1b5   :  { %v6378_v9 = vpop.f32.mrf.mxu1  ;;  %v3524_v44 = vcombine.low %v3516_v22, %v3523_v42  ;;  %v3526_v2 = vcombine.low %v2896_v32, %v2920_v14  ;;  %v1487_v4 = vrot.slane %v1480_v23, %v5463_v40  ;;  %v1245_v27 = vcombine.high %v6327_v61, %v6327_v61 }
 0x1b6   :  { %v6383_v5 = vpop.f32.mrf.mxu0  ;;  %v6387_v33 = vrot.slane %v2913_v55, %v5414_v21  ;;  %v2943_v15 = vcombine.high %v2927_v60, %v2927_v60  ;;  %v2944_v7 = vcombine.high %v2934_v57, %v2934_v57  ;;  %v3527_v62 = vcombine.low %v2934_v57, %v2942_v24 }
 0x1b7   :  { %v5109_v41 = vpop.f32.mrf.mxu1  ;;  %v4159_v11 = vsel %vm4158_vm6, %v3524_v44, -inf  ;;  %v3542_v39 = vrot.slane %v3526_v2, %v5414_v21  ;;  %v1495_v46 = vcombine.low %v1487_v4, %v1494_v31  ;;  %v1252_v38 = vrot.slane %v6327_v61, %v5463_v40 }
 0x1b8   :  { %v4653_v42 = vpop.f32.mrf.mxu0  ;;  %v4160_v30 = vmax.f32 %v4157_v50, %v4159_v11  ;;  %v6394_v28 = vcombine.low %v6387_v33, %v2943_v15  ;;  %v3528_v25 = vcombine.low %v2944_v7, %v2927_v60  ;;  %v3549_v20 = vrot.slane %v3527_v62, %v5414_v21 }
 0x1b9   :  { %v6391_v3 = vpop.f32.mrf.mxu1  ;;  %v3557_v56 = vcombine.low %v3535_v18, %v3542_v39  ;;  %v1650_v50 = vsel %vm1613_vm4, %v1495_v46, -inf  ;;  %v1259_v34 = vrot.slane %v1245_v27, %v5463_v40  ;;  %v2945_v12 = vcombine.high %v6387_v33, %v6387_v33 }
 0x1ba   :  { %v6401_v58 = vpop.f32.mrf.mxu0  ;;  %v4161_v53 = vrot.slane %v4160_v30, 4  ;;  %v1651_v36 = vmax.f32 %v6351_v1, %v1650_v50  ;;  %v3556_v16 = vrot.slane %v3528_v25, %v5414_v21  ;;  %v1260_v0 = vcombine.high %v1252_v38, %v1252_v38 }
 0x1bb   :  { %v5110_v32 = vpop.f32.mrf.mxu1  ;;  %v3565_v51 = vrot.slane %v3557_v56, %v5414_v21  ;;  %v1261_v8 = vcombine.high %v1259_v34, %v1259_v34  ;;  %v1496_v14 = vcombine.low %v1244_v43, %v1252_v38  ;;  %v2946_v37 = vcombine.high %v6331_v63, %v6331_v63 }
 0x1bc   :  { %v4658_v61 = vpop.f32.mrf.mxu0  ;;  %v4162_v22 = vmax.f32 %v4160_v30, %v4161_v53  ;;  %v1652_v23 = vrot.slane %v1651_v36, 4  ;;  %v3558_v31 = vcombine.low %v3549_v20, %v3556_v16  ;;  %v1497_v55 = vcombine.low %v1260_v0, %v1259_v34 }
 0x1bd   :  { %v6410_v18 = vpop.f32.mrf.mxu1  ;;  %v2953_v1 = vrot.slane %v6331_v63, %v5414_v21  ;;  %v1504_v24 = vrot.slane %v1496_v14, %v5463_v40  ;;  %v1513_v2 = vcombine.low %v1261_v8, %v6270_v29  ;;  %v2960_v41 = vrot.slane %v2946_v37, %v5414_v21 }
 0x1be   :  { %v6416_v44 = vpop.f32.mrf.mxu0  ;;  %v4163_v57 = vrot.slane %v4162_v22, 2  ;;  %v1653_v4 = vmax.f32 %v1651_v36, %v1652_v23  ;;  %v3572_v33 = vrot.slane %v3558_v31, %v5414_v21  ;;  %v1511_v15 = vrot.slane %v1497_v55, %v5463_v40 }
 0x1bf   :  { %v5113_v60 = vpop.f32.mrf.mxu1  ;;  %v2961_v43 = vcombine.high %v2953_v1, %v2953_v1  ;;  %v1520_v62 = vrot.slane %v1513_v2, %v5463_v40  ;;  %v2962_v39 = vcombine.high %v2960_v41, %v2960_v41  ;;  %v2969_v42 = vrot.slane %v2953_v1, %v5414_v21 }
 0x1c0   :  { %v4661_v7 = vpop.f32.mrf.mxu0  ;;  %v4164_v63 = vmax.f32 %v4162_v22, %v4163_v57  ;;  %v1654_v30 = vrot.slane %v1653_v4, 2  ;;  %v3573_v29 = vcombine.low %v3565_v51, %v3572_v33  ;;  %v1512_v46 = vcombine.low %v1504_v24, %v1511_v15 }
 0x1c1   :  { %v6423_v11 = vpop.f32.mrf.mxu1  ;;  %v2976_v27 = vrot.slane %v2960_v41, %v5414_v21  ;;  %v1528_v38 = vcombine.low %v1520_v62, %v6285_v47  ;;  %v2983_v32 = vrot.slane %v2961_v43, %v5414_v21  ;;  %v2990_v53 = vrot.slane %v2962_v39, %v5414_v21 }
 0x1c2   :  { %v6428_v20 = vpop.f32.mrf.mxu0  ;;  %v4165_v56 = vrot.slane %v4164_v63, 1  ;;  %v1655_v40 = vmax.f32 %v1653_v4, %v1654_v30  ;;  %v1658_v50 = vsel %vm1611_vm5, %v1512_v46, -inf  ;;  %v3575_v34 = vcombine.low %v2945_v12, %v2969_v42 }
 0x1c3   :  { %v5114_v25 = vpop.f32.mrf.mxu1  ;;  %v3582_v36 = vrot.slane %v6394_v28, %v5414_v21  ;;  %v1659_v61 = vsel %vm1613_vm4, %v1528_v38, -inf  ;;  %v3596_v47 = vrot.slane %v2983_v32, %v5414_v21  ;;  %v4984_v22 = vcombine.high %v2969_v42, %v2983_v32 }
 0x1c4   :  { %v4666_v51 = vpop.f32.mrf.mxu0  ;;  %v6438_v0 = vmax.f32 %v4164_v63, %v4165_v56  ;;  %v1656_v8 = vrot.slane %v1655_v40, 1  ;;  %v1660_v14 = vmax.f32 %v1658_v50, %v1659_v61  ;;  %v3589_v37 = vrot.slane %v3575_v34, %v5414_v21 }
 0x1c5   :  { %v6436_v16 = vpop.f32.mrf.mxu1  ;;  %v3614_v23 = vcombine.low %v2976_v27, %v2990_v53  ;;  %v3611_v28 = vrot.slane %v3596_v47, %v5414_v21  ;;  %v4985_v55 = vcombine.high %v2976_v27, %v2990_v53  ;;  %v3623_v1 = vrot.slane %v4984_v22, %v5414_v21 }
 0x1c6   :  { %v6443_v12 = vpop.f32.mrf.mxu0  ;;  %v4167_v60 = vsel %vm1611_vm5, %v3573_v29, -inf  ;;  %v6448_v57 = vmax.f32 %v1655_v40, %v1656_v8  ;;  %v1661_v24 = vrot.slane %v1660_v14, 4  ;;  %v3597_v2 = vcombine.low %v3582_v36, %v3589_v37 }
 0x1c7   :  { %v5117_v31 = vpop.f32.mrf.mxu1  ;;  %v3630_v41 = vrot.slane %v3614_v23, %v5414_v21  ;;  %v3637_v15 = vrot.slane %v4985_v55, %v5414_v21  ;;  %v4699_v43 = vcombine.high %v6337_v26, %v6337_v26  ;;  %v2995_v7 = vcombine.high %v6343_v48, %v6343_v48 }
 0x1c8   :  { %v4669_v33 = vpop.f32.mrf.mxu0  ;;  %v3002_v63 = vrot.slane %v6343_v48, %v5414_v21  ;;  %v1662_v62 = vmax.f32 %v1660_v14, %v1661_v24  ;;  %v3604_v39 = vrot.slane %v3597_v2, %v5414_v21  ;;  %v4700_v30 = vcombine.high %v6348_v10, %v6348_v10 }
 0x1c9   :  { %v6451_v4 = vpop.f32.mrf.mxu1  ;;  %v3645_v42 = vcombine.low %v3623_v1, %v3630_v41  ;;  %v4716_v27 = vcombine.low %v6337_v26, %v4699_v43  ;;  %v3009_v25 = vrot.slane %v2995_v7, %v5414_v21  ;;  %v4734_v40 = vsel %vm4733_vm7, %v6348_v10, -inf }
 0x1ca   :  { %v6463_v46 = vpop.f32.mrf.mxu0  ;;  %v3010_v56 = vcombine.high %v3002_v63, %v3002_v63  ;;  %v3018_v38 = vrot.slane %v3002_v63, %v5414_v21  ;;  %v1663_v32 = vrot.slane %v1662_v62, 2  ;;  %v3612_v53 = vcombine.low %v3604_v39, %v3611_v28 }
 0x1cb   :  { %v5118_v29 = vpop.f32.mrf.mxu1  ;;  %v6469_v48 = vrot.slane %v3645_v42, %v5414_v21  ;;  %v3011_v36 = vcombine.high %v3009_v25, %v3009_v25  ;;  %v3025_v51 = vrot.slane %v3009_v25, %v5414_v21  ;;  %v4732_v61 = vsel %vm1611_vm5, %v4716_v27, -inf }
 0x1cc   :  { %v4674_v34 = vpop.f32.mrf.mxu0  ;;  %v3032_v26 = vrot.slane %v3010_v56, %v5414_v21  ;;  %v6478_v47 = vmax.f32 %v1662_v62, %v1663_v32  ;;  %v4168_v22 = vsel %vm4158_vm6, %v3612_v53, -inf  ;;  %v4735_v8 = vmax.f32 %v4732_v61, %v4734_v40 }
 0x1cd   :  { %v6473_v50 = vpop.f32.mrf.mxu1  ;;  %v3044_v14 = vcombine.high %v6357_v59, %v6357_v59  ;;  %v4169_v31 = vmax.f32 %v4167_v60, %v4168_v22  ;;  %v3039_v28 = vrot.slane %v3011_v36, %v5414_v21  ;;  %v3041_v55 = vcombine.high %v3025_v51, %v3025_v51 }
 0x1ce   :  { %v6483_v23 = vpop.f32.mrf.mxu0  ;;  %v3616_v1 = vcombine.low %v3018_v38, %v3032_v26  ;;  %v1665_v24 = vrot.slane %v6478_v47, 1  ;;  %v4986_v2 = vcombine.high %v3018_v38, %v3032_v26  ;;  %v4736_v41 = vrot.slane %v4735_v8, 4 }
 0x1cf   :  { %v5121_v37 = vpop.f32.mrf.mxu1  ;;  %v3051_v33 = vrot.slane %v6357_v59, %v5414_v21  ;;  %v4170_v63 = vrot.slane %v4169_v31, 4  ;;  %v3663_v39 = vcombine.low %v3025_v51, %v3039_v28  ;;  %v3684_v42 = vrot.slane %v3041_v55, %v5414_v21 }
 0x1d0   :  { %v4677_v7 = vpop.f32.mrf.mxu0  ;;  %v3644_v62 = vrot.slane %v3616_v1, %v5414_v21  ;;  %v3670_v60 = vrot.slane %v4986_v2, %v5414_v21  ;;  %v4737_v29 = vmax.f32 %v4735_v8, %v4736_v41  ;;  %v3043_v27 = vcombine.high %v3039_v28, %v3039_v28 }
 0x1d1   :  { %v2783_v43 = vpop.f32.mrf.mxu1  ;;  %v3058_v25 = vrot.slane %v3044_v14, %v5414_v21  ;;  %v4171_v32 = vmax.f32 %v4169_v31, %v4170_v63  ;;  %v3677_v59 = vrot.slane %v3663_v39, %v5414_v21  ;;  %v3699_v40 = vrot.slane %v3684_v42, %v5414_v21 }
 0x1d2   :  { %v6493_v38 = vpop.f32.mrf.mxu0  ;;  %v3646_v53 = vcombine.low %v3637_v15, %v3644_v62  ;;  %v4738_v34 = vrot.slane %v4737_v29, 2  ;;  %v3059_v36 = vcombine.high %v3051_v33, %v3051_v33  ;;  %v3067_v26 = vrot.slane %v3051_v33, %v5414_v21 }
 0x1d3   :  { %v5122_v56 = vpop.f32.mrf.mxu1  ;;  %v3060_v51 = vcombine.high %v3058_v25, %v3058_v25  ;;  %v4172_v22 = vrot.slane %v4171_v32, 2  ;;  %v3685_v37 = vcombine.low %v3670_v60, %v3677_v59  ;;  %v3074_v14 = vrot.slane %v3058_v25, %v5414_v21 }
 0x1d4   :  { %v4682_v61 = vpop.f32.mrf.mxu0  ;;  %v3660_v8 = vrot.slane %v3646_v53, %v5414_v21  ;;  %v4739_v28 = vmax.f32 %v4737_v29, %v4738_v34  ;;  %v3081_v31 = vrot.slane %v3059_v36, %v5414_v21  ;;  %v3089_v55 = vcombine.high %v3067_v26, %v3067_v26  ;;  %v6510_v56 = vld [vmem:[%s6792_s4 + $0x2] ss:$0 sm:$0xff] }
 0x1d5   :  { %v3088_v15 = vrot.slane %v3060_v51, %v5414_v21  ;;  %v4173_v2 = vmax.f32 %v4171_v32, %v4172_v22  ;;  %v3692_v33 = vrot.slane %v3685_v37, %v5414_v21  ;;  %v3090_v43 = vcombine.high %v3074_v14, %v3074_v14 }
 0x1d6   :  { %v6502_v1 = vpop.f32.mrf.mxu0  ;;  %v3661_v41 = vcombine.low %v6469_v48, %v3660_v8  ;;  %v4740_v7 = vrot.slane %v4739_v28, 1  ;;  %v3091_v63 = vcombine.high %v3081_v31, %v3081_v31  ;;  %v3701_v62 = vcombine.low %v3043_v27, %v3067_v26 }
 0x1d7   :  { %v3702_v39 = vcombine.low %v3081_v31, %v3089_v55  ;;  %v4174_v60 = vrot.slane %v4173_v2, 1  ;;  %v3700_v29 = vcombine.low %v3692_v33, %v3699_v40  ;;  %v3704_v32 = vcombine.low %v3088_v15, %v3090_v43 }
 0x1d8   :  { %v4685_v42 = vpop.f32.mrf.mxu0  ;;  %v4176_v25 = vsel %vm1611_vm5, %v3661_v41, -inf  ;;  %v4741_v53 = vmax.f32 %v4739_v28, %v4740_v7  ;;  %v3703_v48 = vcombine.low %v3091_v63, %v3074_v14  ;;  %v3711_v59 = vrot.slane %v3701_v62, %v5414_v21 }
 0x1d9   :  { %v3718_v34 = vrot.slane %v3702_v39, %v5414_v21  ;;  %v6514_v36 = vmax.f32 %v4173_v2, %v4174_v60  ;;  %v4177_v27 = vsel %vm4158_vm6, %v3700_v29, -inf  ;;  %v3732_v40 = vrot.slane %v3704_v32, %v5414_v21 }
 0x1da   :  { %v4701_v51 = vcombine.high %v6369_v35, %v6369_v35  ;;  %v4178_v26 = vmax.f32 %v4176_v25, %v4177_v27  ;;  %v6521_v61 = vadd.f32 %v6510_v56, %v4741_v53  ;;  %v3725_v22 = vrot.slane %v3703_v48, %v5414_v21 }
 0x1db   :  { %v3733_v8 = vcombine.low %v3711_v59, %v3718_v34  ;;  %v4717_v37 = vcombine.low %v4700_v30, %v6369_v35  ;;  %v3092_v28 = vcombine.high %v3088_v15, %v3088_v15  ;;  %v3093_v31 = vcombine.high %v6378_v9, %v6378_v9 }
 0x1dc   :  { %v4743_v14 = vsel %vm4733_vm7, %v4701_v51, -inf  ;;  %v4179_v55 = vrot.slane %v4178_v26, 4  ;;  %v4817_v2 = vmax.f32 %v6521_v61, 0.0  ;;  %v3734_v41 = vcombine.low %v3725_v22, %v3732_v40 }
 0x1dd   :  { %v3741_v33 = vrot.slane %v3733_v8, %v5414_v21  ;;  %v4742_v43 = vsel %vm1611_vm5, %v4717_v37, -inf  ;;  %v3100_v7 = vrot.slane %v6378_v9, %v5414_v21  ;;  %v3107_v10 = vrot.slane %v3093_v31, %v5414_v21 }
 0x1de   :  { %v4702_v35 = vcombine.high %v6383_v5, %v6383_v5  ;;  %v4180_v30 = vmax.f32 %v4178_v26, %v4179_v55  ;;  %v3748_v15 = vrot.slane %v3734_v41, %v5414_v21  ;;  %v4744_v63 = vmax.f32 %v4742_v43, %v4743_v14 }
 0x1df   :  { %v3142_v62 = vcombine.high %v6391_v3, %v6391_v3  ;;  %v3108_v39 = vcombine.high %v3100_v7, %v3100_v7  ;;  %v3109_v42 = vcombine.high %v3107_v10, %v3107_v10  ;;  %v3116_v60 = vrot.slane %v3100_v7, %v5414_v21 }
 0x1e0   :  { %v3123_v29 = vrot.slane %v3107_v10, %v5414_v21  ;;  %v4181_v25 = vrot.slane %v4180_v30, 2  ;;  %v3749_v9 = vcombine.low %v3741_v33, %v3748_v15  ;;  %v4745_v32 = vrot.slane %v4744_v63, 4 }
 0x1e1   :  { %v4718_v53 = vcombine.low %v6383_v5, %v4702_v35  ;;  %v3130_v48 = vrot.slane %v3108_v39, %v5414_v21  ;;  %v3137_v59 = vrot.slane %v3109_v42, %v5414_v21  ;;  %v3138_v34 = vcombine.high %v3116_v60, %v3116_v60 }
 0x1e2   :  { %v3750_v27 = vcombine.low %v3092_v28, %v3116_v60  ;;  %v6547_v40 = vmax.f32 %v4180_v30, %v4181_v25  ;;  %v4185_v51 = vsel %vm1611_vm5, %v3749_v9, -inf  ;;  %v4746_v26 = vmax.f32 %v4744_v63, %v4745_v32 }
 0x1e3   :  { %v3149_v22 = vrot.slane %v6391_v3, %v5414_v21  ;;  %v3140_v8 = vcombine.high %v3130_v48, %v3130_v48  ;;  %v3751_v37 = vcombine.low %v3130_v48, %v3138_v34  ;;  %v3789_v31 = vcombine.low %v3123_v29, %v3137_v59 }
 0x1e4   :  { %v3758_v14 = vrot.slane %v3750_v27, %v5414_v21  ;;  %v4747_v5 = vrot.slane %v4746_v26, 2  ;;  %v4987_v55 = vcombine.high %v3123_v29, %v3137_v59  ;;  %v3156_v41 = vrot.slane %v3142_v62, %v5414_v21 }
 0x1e5   :  { %v3157_v33 = vcombine.high %v3149_v22, %v3149_v22  ;;  %v3765_v28 = vrot.slane %v3751_v37, %v5414_v21  ;;  %v3772_v43 = vrot.slane %v3140_v8, %v5414_v21  ;;  %v3799_v7 = vrot.slane %v3789_v31, %v5414_v21 }
 0x1e6   :  { %v3165_v10 = vrot.slane %v3149_v22, %v5414_v21  ;;  %v4748_v35 = vmax.f32 %v4746_v26, %v4747_v5  ;;  %v3806_v3 = vrot.slane %v4987_v55, %v5414_v21  ;;  %v3158_v30 = vcombine.high %v3156_v41, %v3156_v41 }
 0x1e7   :  { %v3172_v15 = vrot.slane %v3156_v41, %v5414_v21  ;;  %v3773_v63 = vcombine.low %v3758_v14, %v3765_v28  ;;  %v3787_v39 = vrot.slane %v3772_v43, %v5414_v21  ;;  %v3179_v62 = vrot.slane %v3157_v33, %v5414_v21 }
 0x1e8   :  { %v4703_v42 = vcombine.high %v6401_v58, %v6401_v58  ;;  %v4749_v60 = vrot.slane %v4748_v35, 1  ;;  %v3821_v29 = vcombine.low %v3799_v7, %v3806_v3  ;;  %v3186_v25 = vrot.slane %v3158_v30, %v5414_v21 }
 0x1e9   :  { %v4751_v9 = vsel %vm1611_vm5, %v4718_v53, -inf  ;;  %v3780_v32 = vrot.slane %v3773_v63, %v5414_v21  ;;  %v3791_v48 = vcombine.low %v3165_v10, %v3179_v62  ;;  %v4988_v59 = vcombine.high %v3165_v10, %v3179_v62 }
 0x1ea   :  { %v4752_v34 = vsel %vm4733_vm7, %v6401_v58, -inf  ;;  %v4750_v27 = vmax.f32 %v4748_v35, %v4749_v60  ;;  %v3829_v26 = vrot.slane %v3821_v29, %v5414_v21  ;;  %v3838_v22 = vcombine.low %v3172_v15, %v3186_v25 }
 0x1eb   :  { %v4989_v8 = vcombine.high %v3172_v15, %v3186_v25  ;;  %v3788_v37 = vcombine.low %v3780_v32, %v3787_v39  ;;  %v3813_v14 = vrot.slane %v3791_v48, %v5414_v21  ;;  %v3820_v31 = vrot.slane %v4988_v59, %v5414_v21 }
 0x1ec   :  { %v4753_v5 = vmax.f32 %v4751_v9, %v4752_v34  ;;  %v4810_v53 = vadd.f32 %v6510_v56, %v4750_v27  ;;  %v3846_v55 = vrot.slane %v3838_v22, %v5414_v21  ;;  %v3191_v58 = vcombine.high %v6410_v18, %v6410_v18 }
 0x1ed   :  { %v3853_v41 = vrot.slane %v4989_v8, %v5414_v21  ;;  %v4186_v33 = vsel %vm4158_vm6, %v3788_v37, -inf  ;;  %v3822_v28 = vcombine.low %v3813_v14, %v3820_v31  ;;  %v3198_v7 = vrot.slane %v6410_v18, %v5414_v21 }
 0x1ee   :  { %v4754_v43 = vrot.slane %v4753_v5, 4  ;;  %v4818_v10 = vmax.f32 %v4810_v53, 0.0  ;;  %v4187_v35 = vmax.f32 %v4185_v51, %v4186_v33  ;;  %v3205_v30 = vrot.slane %v3191_v58, %v5414_v21 }
 0x1ef   :  { %v3861_v3 = vcombine.low %v3846_v55, %v3853_v41  ;;  %v3836_v15 = vrot.slane %v3822_v28, %v5414_v21  ;;  %v3206_v39 = vcombine.high %v3198_v7, %v3198_v7  ;;  %v3214_v62 = vrot.slane %v3198_v7, %v5414_v21 }
 0x1f0   :  { %v4755_v63 = vmax.f32 %v4753_v5, %v4754_v43  ;;  %v6583_v60 = vrot.slane %v4818_v10, 7  ;;  %v4188_v29 = vrot.slane %v4187_v35, 4  ;;  %v3207_v25 = vcombine.high %v3205_v30, %v3205_v30 }
 0x1f1   :  { %v3221_v9 = vrot.slane %v3205_v30, %v5414_v21  ;;  %v3837_v32 = vcombine.low %v3829_v26, %v3836_v15  ;;  %v3228_v18 = vrot.slane %v3206_v39, %v5414_v21  ;;  %v3236_v51 = vcombine.high %v3214_v62, %v3214_v62 }
 0x1f2   :  { %v4756_v48 = vrot.slane %v4755_v63, 2  ;;  %v6587_v59 = vmax.f32 %v4187_v35, %v4188_v29  ;;  %v3235_v34 = vrot.slane %v3207_v25, %v5414_v21  ;;  %v3860_v22 = vrot.slane %v3214_v62, %v5414_v21 }
 0x1f3   :  { %v3237_v27 = vcombine.high %v3221_v9, %v3221_v9  ;;  %v3238_v37 = vcombine.high %v3228_v18, %v3228_v18  ;;  %v3868_v14 = vrot.slane %v3861_v3, %v5414_v21  ;;  %v3877_v31 = vcombine.low %v3228_v18, %v3236_v51 }
 0x1f4   :  { %v4757_v8 = vmax.f32 %v4755_v63, %v4756_v48  ;;  %v4190_v5 = vrot.slane %v6587_v59, 2  ;;  %v3875_v26 = vrot.slane %v3860_v22, %v5414_v21  ;;  %v4194_v55 = vsel %vm1611_vm5, %v3837_v32, -inf }
 0x1f5   :  { %v3879_v53 = vcombine.low %v3235_v34, %v3237_v27  ;;  %v3878_v58 = vcombine.low %v3238_v37, %v3221_v9  ;;  %v3887_v33 = vrot.slane %v3877_v31, %v5414_v21  ;;  %v4704_v28 = vcombine.high %v6416_v44, %v6416_v44 }
 0x1f6   :  { %v4758_v41 = vrot.slane %v4757_v8, 1  ;;  %v3876_v43 = vcombine.low %v3868_v14, %v3875_v26  ;;  %v4719_v7 = vcombine.low %v4703_v42, %v6416_v44  ;;  %v3239_v10 = vcombine.high %v3235_v34, %v3235_v34 }
 0x1f7   :  { %v3240_v35 = vcombine.high %v6423_v11, %v6423_v11  ;;  %v3894_v30 = vrot.slane %v3878_v58, %v5414_v21  ;;  %v4761_v15 = vsel %vm4733_vm7, %v4704_v28, -inf  ;;  %v3247_v63 = vrot.slane %v6423_v11, %v5414_v21 }
 0x1f8   :  { %v4759_v3 = vmax.f32 %v4757_v8, %v4758_v41  ;;  %v4195_v39 = vsel %vm4158_vm6, %v3876_v43, -inf  ;;  %v4760_v62 = vsel %vm1611_vm5, %v4719_v7, -inf  ;;  %v3901_v44 = vrot.slane %v3879_v53, %v5414_v21 }
 0x1f9   :  { %v3254_v29 = vrot.slane %v3240_v35, %v5414_v21  ;;  %v3909_v25 = vcombine.low %v3887_v33, %v3894_v30  ;;  %v4196_v9 = vmax.f32 %v4194_v55, %v4195_v39  ;;  %v4762_v32 = vmax.f32 %v4760_v62, %v4761_v15 }
 0x1fa   :  { %v4811_v42 = vadd.f32 %v6510_v56, %v4759_v3  ;;  %v3255_v48 = vcombine.high %v3247_v63, %v3247_v63  ;;  %v3263_v51 = vrot.slane %v3247_v63, %v5414_v21  ;;  %v4705_v58 = vcombine.high %v6428_v20, %v6428_v20 }
 0x1fb   :  { %v3256_v18 = vcombine.high %v3254_v29, %v3254_v29  ;;  %v3270_v34 = vrot.slane %v3254_v29, %v5414_v21  ;;  %v3917_v27 = vrot.slane %v3909_v25, %v5414_v21  ;;  %v4197_v22 = vrot.slane %v4196_v9, 4 }
 0x1fc   :  { %v4819_v11 = vmax.f32 %v4811_v42, 0.0  ;;  %v4763_v8 = vrot.slane %v4762_v32, 4  ;;  %v3277_v37 = vrot.slane %v3255_v48, %v5414_v21  ;;  %v3285_v31 = vcombine.high %v3263_v51, %v3263_v51 }
 0x1fd   :  { %v3284_v14 = vrot.slane %v3256_v18, %v5414_v21  ;;  %v3880_v26 = vcombine.low %v3239_v10, %v3263_v51  ;;  %v4198_v55 = vmax.f32 %v4196_v9, %v4197_v22  ;;  %v4720_v15 = vcombine.low %v6428_v20, %v4705_v58 }
 0x1fe   :  { %v6615_v53 = vrot.slane %v4819_v11, 6  ;;  %v4764_v41 = vmax.f32 %v4762_v32, %v4763_v8  ;;  %v3287_v33 = vcombine.high %v3277_v37, %v3277_v37  ;;  %v3926_v43 = vcombine.low %v3277_v37, %v3285_v31 }
 0x1ff   :  { %v3908_v28 = vrot.slane %v3880_v26, %v5414_v21  ;;  %v3948_v7 = vrot.slane %v3284_v14, %v5414_v21  ;;  %v4199_v35 = vrot.slane %v4198_v55, 2  ;;  %v4990_v30 = vcombine.high %v3270_v34, %v3284_v14 }
 0x200   :  { %v4765_v3 = vrot.slane %v4764_v41, 2  ;;  %v3927_v10 = vcombine.low %v3287_v33, %v3270_v34  ;;  %v3934_v39 = vrot.slane %v3926_v43, %v5414_v21  ;;  %v3289_v9 = vcombine.high %v6436_v16, %v6436_v16 }
 0x201   :  { %v3910_v63 = vcombine.low %v3901_v44, %v3908_v28  ;;  %v3963_v62 = vrot.slane %v3948_v7, %v5414_v21  ;;  %v6624_v29 = vmax.f32 %v4198_v55, %v4199_v35  ;;  %v3975_v25 = vrot.slane %v4990_v30, %v5414_v21 }
 0x202   :  { %v4766_v42 = vmax.f32 %v4764_v41, %v4765_v3  ;;  %v3941_v48 = vrot.slane %v3927_v10, %v5414_v21  ;;  %v3296_v20 = vrot.slane %v6436_v16, %v5414_v21  ;;  %v4706_v44 = vcombine.high %v6443_v12, %v6443_v12 }
 0x203   :  { %v3924_v32 = vrot.slane %v3910_v63, %v5414_v21  ;;  %v3303_v51 = vrot.slane %v3289_v9, %v5414_v21  ;;  %v4769_v34 = vsel %vm1611_vm5, %v4720_v15, -inf  ;;  %v4770_v11 = vsel %vm4733_vm7, %v6443_v12, -inf }
 0x204   :  { %v4767_v18 = vrot.slane %v4766_v42, 1  ;;  %v3949_v8 = vcombine.low %v3934_v39, %v3941_v48  ;;  %v3304_v37 = vcombine.high %v3296_v20, %v3296_v20  ;;  %v3312_v14 = vrot.slane %v3296_v20, %v5414_v21 }
 0x205   :  { %v3925_v22 = vcombine.low %v3917_v27, %v3924_v32  ;;  %v3305_v26 = vcombine.high %v3303_v51, %v3303_v51  ;;  %v3319_v16 = vrot.slane %v3303_v51, %v5414_v21  ;;  %v4771_v55 = vmax.f32 %v4769_v34, %v4770_v11 }
 0x206   :  { %v4768_v31 = vmax.f32 %v4766_v42, %v4767_v18  ;;  %v3956_v41 = vrot.slane %v3949_v8, %v5414_v21  ;;  %v3326_v33 = vrot.slane %v3304_v37, %v5414_v21  ;;  %v3338_v28 = vcombine.high %v6451_v4, %v6451_v4 }
 0x207   :  { %v4203_v58 = vsel %vm1611_vm5, %v3925_v22, -inf  ;;  %v3333_v27 = vrot.slane %v3305_v26, %v5414_v21  ;;  %v4772_v43 = vrot.slane %v4771_v55, 4  ;;  %v3345_v7 = vrot.slane %v6451_v4, %v5414_v21 }
 0x208   :  { %v4812_v12 = vadd.f32 %v6510_v56, %v4768_v31  ;;  %v3964_v35 = vcombine.low %v3956_v41, %v3963_v62  ;;  %v3966_v3 = vcombine.low %v3312_v14, %v3326_v33  ;;  %v4991_v30 = vcombine.high %v3312_v14, %v3326_v33 }
 0x209   :  { %v3352_v15 = vrot.slane %v3338_v28, %v5414_v21  ;;  %v3968_v10 = vcombine.low %v3319_v16, %v3333_v27  ;;  %v4992_v39 = vcombine.high %v3319_v16, %v3333_v27  ;;  %v4773_v42 = vmax.f32 %v4771_v55, %v4772_v43 }
 0x20a   :  { %v4820_v63 = vmax.f32 %v4812_v12, 0.0  ;;  %v4204_v9 = vsel %vm4158_vm6, %v3964_v35, -inf  ;;  %v3982_v32 = vrot.slane %v3966_v3, %v5414_v21  ;;  %v3989_v48 = vrot.slane %v4991_v30, %v5414_v21 }
 0x20b   :  { %v3353_v20 = vcombine.high %v3345_v7, %v3345_v7  ;;  %v6656_v51 = vmax.f32 %v4203_v58, %v4204_v9  ;;  %v3996_v4 = vrot.slane %v3968_v10, %v5414_v21  ;;  %v4022_v62 = vrot.slane %v4992_v39, %v5414_v21 }
 0x20c   :  { %v6654_v18 = vrot.slane %v4820_v63, 5  ;;  %v3997_v34 = vcombine.low %v3975_v25, %v3982_v32  ;;  %v4774_v11 = vrot.slane %v4773_v42, 2  ;;  %v3354_v22 = vcombine.high %v3352_v15, %v3352_v15 }
 0x20d   :  { %v3361_v8 = vrot.slane %v3345_v7, %v5414_v21  ;;  %v4206_v37 = vrot.slane %v6656_v51, 4  ;;  %v3998_v14 = vcombine.low %v3989_v48, %v3996_v4  ;;  %v3368_v31 = vrot.slane %v3352_v15, %v5414_v21 }
 0x20e   :  { %v3375_v26 = vrot.slane %v3353_v20, %v5414_v21  ;;  %v4005_v16 = vrot.slane %v3997_v34, %v5414_v21  ;;  %v4775_v55 = vmax.f32 %v4773_v42, %v4774_v11  ;;  %v3382_v41 = vrot.slane %v3354_v22, %v5414_v21 }
 0x20f   :  { %v3383_v58 = vcombine.high %v3361_v8, %v3361_v8  ;;  %v4012_v33 = vrot.slane %v3998_v14, %v5414_v21  ;;  %v3384_v25 = vcombine.high %v3368_v31, %v3368_v31  ;;  %v4707_v7 = vcombine.high %v6463_v46, %v6463_v46 }
 0x210   :  { %v3385_v28 = vcombine.high %v3375_v26, %v3375_v26  ;;  %v4015_v12 = vcombine.low %v3361_v8, %v3375_v26  ;;  %v4776_v27 = vrot.slane %v4775_v55, 1  ;;  %v4721_v35 = vcombine.low %v4706_v44, %v6463_v46 }
 0x211   :  { %v4036_v43 = vrot.slane %v3383_v58, %v5414_v21  ;;  %v4013_v3 = vcombine.low %v4005_v16, %v4012_v33  ;;  %v4054_v63 = vcombine.low %v3382_v41, %v3384_v25  ;;  %v4779_v9 = vsel %vm4733_vm7, %v4707_v7, -inf }
 0x212   :  { %v4029_v30 = vrot.slane %v4015_v12, %v5414_v21  ;;  %v4053_v15 = vcombine.low %v3385_v28, %v3368_v31  ;;  %v4777_v10 = vmax.f32 %v4775_v55, %v4776_v27  ;;  %v4778_v42 = vsel %vm1611_vm5, %v4721_v35, -inf }
 0x213   :  { %v4051_v39 = vrot.slane %v4036_v43, %v5414_v21  ;;  %v4070_v20 = vrot.slane %v4054_v63, %v5414_v21  ;;  %v4212_v4 = vsel %vm1611_vm5, %v4013_v3, -inf  ;;  %v4780_v44 = vmax.f32 %v4778_v42, %v4779_v9 }
 0x214   :  { %v4037_v32 = vcombine.low %v4022_v62, %v4029_v30  ;;  %v4063_v48 = vrot.slane %v4053_v15, %v5414_v21  ;;  %v4813_v46 = vadd.f32 %v6510_v56, %v4777_v10  ;;  %v3386_v34 = vcombine.high %v3382_v41, %v3382_v41 }
 0x215   :  { %v3387_v11 = vcombine.high %v6473_v50, %v6473_v50  ;;  %v3394_v14 = vrot.slane %v6473_v50, %v5414_v21  ;;  %v4708_v62 = vcombine.high %v6483_v23, %v6483_v23  ;;  %v4781_v26 = vrot.slane %v4780_v44, 4 }
 0x216   :  { %v4044_v22 = vrot.slane %v4037_v32, %v5414_v21  ;;  %v4085_v8 = vcombine.low %v4063_v48, %v4070_v20  ;;  %v4821_v31 = vmax.f32 %v4813_v46, 0.0  ;;  %v4709_v55 = vcombine.high %v6493_v38, %v6493_v38 }
 0x217   :  { %v3401_v16 = vrot.slane %v3387_v11, %v5414_v21  ;;  %v3402_v33 = vcombine.high %v3394_v14, %v3394_v14  ;;  %v3410_v25 = vrot.slane %v3394_v14, %v5414_v21  ;;  %v4782_v12 = vmax.f32 %v4780_v44, %v4781_v26 }
 0x218   :  { %v4052_v41 = vcombine.low %v4044_v22, %v4051_v39  ;;  %v4093_v58 = vrot.slane %v4085_v8, %v5414_v21  ;;  %v4894_v28 = vrot.slane %v4821_v31, 4  ;;  %v4722_v32 = vcombine.low %v6483_v23, %v4708_v62 }
 0x219   :  { %v3403_v50 = vcombine.high %v3401_v16, %v3401_v16  ;;  %v3417_v27 = vrot.slane %v3401_v16, %v5414_v21  ;;  %v3424_v7 = vrot.slane %v3402_v33, %v5414_v21  ;;  %v3432_v35 = vcombine.high %v3410_v25, %v3410_v25 }
 0x21a   :  { %v4213_v43 = vsel %vm4158_vm6, %v4052_v41, -inf  ;;  %v4055_v3 = vcombine.low %v3386_v34, %v3410_v25  ;;  %v4783_v15 = vrot.slane %v4782_v12, 2  ;;  %v4788_v22 = vsel %vm4733_vm7, %v6493_v38, -inf }
 0x21b   :  { %v4214_v30 = vmax.f32 %v4212_v4, %v4213_v43  ;;  %v3431_v63 = vrot.slane %v3403_v50, %v5414_v21  ;;  %v3433_v10 = vcombine.high %v3417_v27, %v3417_v27  ;;  %v3434_v39 = vcombine.high %v3424_v7, %v3424_v7 }
 0x21c   :  { %v4056_v42 = vcombine.low %v3424_v7, %v3432_v35  ;;  %v4077_v9 = vrot.slane %v4055_v3, %v5414_v21  ;;  %v4784_v20 = vmax.f32 %v4782_v12, %v4783_v15  ;;  %v4787_v4 = vsel %vm1611_vm5, %v4722_v32, -inf }
 0x21d   :  { %v4215_v48 = vrot.slane %v4214_v30, 4  ;;  %v3435_v46 = vcombine.high %v3431_v63, %v3431_v63  ;;  %v4103_v44 = vcombine.low %v3431_v63, %v3433_v10  ;;  %v4102_v11 = vcombine.low %v3434_v39, %v3417_v27 }
 0x21e   :  { %v4084_v34 = vrot.slane %v4056_v42, %v5414_v21  ;;  %v4785_v8 = vrot.slane %v4784_v20, 1  ;;  %v4789_v26 = vmax.f32 %v4787_v4, %v4788_v22  ;;  %v4710_v16 = vcombine.high %v6502_v1, %v6502_v1 }
 0x21f   :  { %v4117_v14 = vrot.slane %v4103_v44, %v5414_v21  ;;  %v4124_v31 = vrot.slane %v3435_v46, %v5414_v21  ;;  %v4110_v62 = vrot.slane %v4102_v11, %v5414_v21  ;;  %v4723_v41 = vcombine.low %v4709_v55, %v6502_v1  ;;  %v6732_v44 = vld [vmem:[%s6792_s4 + $0x1] ss:$0 sm:$0xff] }
 0x220   :  { %v4086_v23 = vcombine.low %v4077_v9, %v4084_v34  ;;  %v4786_v33 = vmax.f32 %v4784_v20, %v4785_v8  ;;  %v4790_v12 = vrot.slane %v4789_v26, 4  ;;  %v4889_v38 = vsel %vm4834_vm8, %v6583_v60, %v4817_v2 }
 0x221   :  { %v4139_v25 = vrot.slane %v4124_v31, %v5414_v21  ;;  %v4125_v27 = vcombine.low %v4110_v62, %v4117_v14  ;;  %v4796_v43 = vsel %vm1611_vm5, %v4723_v41, -inf  ;;  %v4797_v7 = vsel %vm4733_vm7, %v4710_v16, -inf }
 0x222   :  { %v4100_v50 = vrot.slane %v4086_v23, %v5414_v21  ;;  %v4791_v35 = vmax.f32 %v4789_v26, %v4790_v12  ;;  %v4798_v3 = vmax.f32 %v4796_v43, %v4797_v7  ;;  %v4814_v1 = vadd.f32 %v6510_v56, %v4786_v33 }
 0x223   :  { %v4891_v55 = vsel %vm4837_vm9, %v6615_v53, %v4889_v38  ;;  %v4132_v61 = vrot.slane %v4125_v27, %v5414_v21  ;;  %v4183_v60 = vrot.slane %v6547_v40, 1  ;;  %v4191_v53 = vmax.f32 %v6587_v59, %v4190_v5 }
 0x224   :  { %v4101_v15 = vcombine.low %v4093_v58, %v4100_v50  ;;  %v4893_v2 = vsel %vm4840_vm10, %v6654_v18, %v4891_v55  ;;  %v4792_v63 = vrot.slane %v4791_v35, 2  ;;  %v4799_v10 = vrot.slane %v4798_v3, 4 }
 0x225   :  { %v4822_v39 = vmax.f32 %v4814_v1, 0.0  ;;  %v4895_v42 = vsel %vm4843_vm11, %v4894_v28, %v4893_v2  ;;  %v4140_v9 = vcombine.low %v4132_v61, %v4139_v25  ;;  %v4184_v20 = vmax.f32 %v6547_v40, %v4183_v60 }
 0x226   :  { %v4221_v32 = vsel %vm1611_vm5, %v4101_v15, -inf  ;;  %v4793_v21 = vmax.f32 %v4791_v35, %v4792_v63  ;;  %v4800_v58 = vmax.f32 %v4798_v3, %v4799_v10  ;;  %v4201_v18 = vrot.slane %v6624_v29, 1 }
 0x227   :  { %v4896_v46 = vrot.slane %v4822_v39, 3  ;;  %v4192_v28 = vrot.slane %v4191_v53, 1  ;;  %v4207_v34 = vmax.f32 %v6656_v51, %v4206_v37  ;;  %v4216_v40 = vmax.f32 %v4214_v30, %v4215_v48 }
 0x228   :  { %v4222_v11 = vsel %vm4158_vm6, %v4140_v9, -inf  ;;  %v4794_v4 = vrot.slane %v4793_v21, 1  ;;  %v4801_v59 = vrot.slane %v4800_v58, 2  ;;  %v4202_v22 = vmax.f32 %v6624_v29, %v4201_v18 }
 0x229   :  { %v4897_v5 = vsel %vm4846_vm12, %v4896_v46, %v4895_v42  ;;  %v4193_v8 = vmax.f32 %v4191_v53, %v4192_v28  ;;  %v4208_v14 = vrot.slane %v4207_v34, 2  ;;  %v4217_v31 = vrot.slane %v4216_v40, 2 }
 0x22a   :  { %v4223_v26 = vmax.f32 %v4221_v32, %v4222_v11  ;;  %v4795_v23 = vmax.f32 %v4793_v21, %v4794_v4  ;;  %v4802_v62 = vmax.f32 %v4800_v58, %v4801_v59  ;;  %v4234_v16 = vadd.f32 %v6732_v44, %v6438_v0 }
 0x22b   :  { %v4235_v51 = vadd.f32 %v6732_v44, %v6514_v36  ;;  %v4209_v37 = vmax.f32 %v4207_v34, %v4208_v14  ;;  %v4218_v30 = vmax.f32 %v4216_v40, %v4217_v31  ;;  %v4236_v41 = vadd.f32 %v6732_v44, %v4184_v20  ;;  %v5170_v31 = vld [vmem:[%s6792_s4] ss:$0 sm:$0xff]  ;;  %s5202_s4 = smov 8  }
 0x22c   :  { %v4224_v48 = vrot.slane %v4223_v26, 4  ;;  %v4803_v33 = vrot.slane %v4802_v62, 1  ;;  %v4815_v29 = vadd.f32 %v6510_v56, %v4795_v23  ;;  %v4237_v25 = vadd.f32 %v6732_v44, %v4193_v8 }
 0x22d   :  { %v4238_v12 = vadd.f32 %v6732_v44, %v4202_v22  ;;  %v4210_v38 = vrot.slane %v4209_v37, 1  ;;  %v4219_v50 = vrot.slane %v4218_v30, 1  ;;  %v4242_v0 = vmax.f32 %v4234_v16, 0.0 }
 0x22e   :  { %v4225_v27 = vmax.f32 %v4223_v26, %v4224_v48  ;;  %v4804_v43 = vmax.f32 %v4802_v62, %v4803_v33  ;;  %v4823_v7 = vmax.f32 %v4815_v29, 0.0  ;;  %v4243_v36 = vmax.f32 %v4235_v51, 0.0 }
 0x22f   :  { %v4244_v35 = vmax.f32 %v4236_v41, 0.0  ;;  %v4211_v3 = vmax.f32 %v4209_v37, %v4210_v38  ;;  %v4220_v1 = vmax.f32 %v4218_v30, %v4219_v50  ;;  %v4245_v15 = vmax.f32 %v4237_v25, 0.0 }
 0x230   :  { %v4226_v55 = vrot.slane %v4225_v27, 2  ;;  %v4816_v61 = vadd.f32 %v6510_v56, %v4804_v43  ;;  %v4898_v2 = vrot.slane %v4823_v7, 2  ;;  %v4246_v60 = vmax.f32 %v4238_v12, 0.0 }
 0x231   :  { %v4863_v63 = vrot.slane %v4243_v36, 7  ;;  %v4239_v39 = vadd.f32 %v6732_v44, %v4211_v3  ;;  %v4240_v42 = vadd.f32 %v6732_v44, %v4220_v1  ;;  %v4865_v9 = vrot.slane %v4244_v35, 6 }
 0x232   :  { %v4227_v10 = vmax.f32 %v4225_v27, %v4226_v55  ;;  %v4824_v32 = vmax.f32 %v4816_v61, 0.0  ;;  %v4899_v20 = vsel %vm4849_vm13, %v4898_v2, %v4897_v5  ;;  %v4867_v21 = vrot.slane %v4245_v15, 5 }
 0x233   :  { %v4864_v53 = vsel %vm4834_vm8, %v4863_v63, %v4242_v0  ;;  %v4247_v46 = vmax.f32 %v4239_v39, 0.0  ;;  %v4248_v18 = vmax.f32 %v4240_v42, 0.0  ;;  %v4869_v40 = vrot.slane %v4246_v60, 4 }
 0x234   :  { %v4228_v58 = vrot.slane %v4227_v10, 1  ;;  %v4866_v56 = vsel %vm4837_vm9, %v4865_v9, %v4864_v53  ;;  %v4900_v28 = vrot.slane %v4824_v32, 1  ;;  %v1666_v11 = vmax.f32 %v6478_v47, %v1665_v24 }
 0x235   :  { %v4868_v34 = vsel %vm4840_vm10, %v4867_v21, %v4866_v56  ;;  %v4871_v59 = vrot.slane %v4247_v46, 3  ;;  %v4873_v22 = vrot.slane %v4248_v18, 2  ;;  %v1684_v5 = vmax.f32 %v6288_v17, %v1683_v45 }
 0x236   :  { %v4229_v4 = vmax.f32 %v4227_v10, %v4228_v58  ;;  %v4901_v8 = vsel %vm4852_vm14, %v4900_v28, %v4899_v20  ;;  %v4870_v14 = vsel %vm4843_vm11, %v4869_v40, %v4868_v34  ;;  %v1692_v26 = vadd.f32 %v5170_v31, %v6374_v6 }
 0x237   :  { %v1693_v23 = vadd.f32 %v5170_v31, %v6448_v57  ;;  %4902 = vrot.lane.b32.xlu1 %v4901_v8, %s5201_s28  ;;  %v4872_v24 = vsel %vm4846_vm12, %v4871_v59, %v4870_v14  ;;  %v1694_v62 = vadd.f32 %v5170_v31, %v1666_v11  ;;  %v1695_v17 = vadd.f32 %v5170_v31, %v6292_v13 }
 0x238   :  { %v4241_v47 = vadd.f32 %v6732_v44, %v4229_v4  ;;  %v4874_v45 = vsel %vm4849_vm13, %v4873_v22, %v4872_v24  ;;  %v1696_v16 = vadd.f32 %v5170_v31, %v1684_v5  ;;  %v1700_v51 = vmax.f32 %v1692_v26, 0.0 }
 0x239   :  { %v1701_v37 = vmax.f32 %v1693_v23, 0.0  ;;  %v1702_v48 = vmax.f32 %v1694_v62, 0.0  ;;  %v1703_v41 = vmax.f32 %v1695_v17, 0.0  ;;  %v4835_v6 = vsel %vm4834_vm8, %v6309_v54, %v1697_v19 }
 0x23a   :  { %v4249_v30 = vmax.f32 %v4241_v47, 0.0  ;;  %v1704_v57 = vmax.f32 %v1696_v16, 0.0  ;;  %v4838_v44 = vsel %vm4837_vm9, %v6365_v52, %v4835_v6  ;;  %v4839_v33 = vrot.slane %v1700_v51, 5 }
 0x23b   :  { %v4842_v29 = vrot.slane %v1701_v37, 4  ;;  %v4845_v25 = vrot.slane %v1702_v48, 3  ;;  %v4848_v27 = vrot.slane %v1703_v41, 2 }
 0x23c   :  { %v4875_v13 = vrot.slane %v4249_v30, 1  ;;  %v4841_v12 = vsel %vm4840_vm10, %v4839_v33, %v4838_v44  ;;  %v4851_v19 = vrot.slane %v1704_v57, 1 }
 0x23d   :  { %v4844_v50 = vsel %vm4843_vm11, %v4842_v29, %v4841_v12 }
 0x23e   :  { %v4876_v38 = vsel %vm4852_vm14, %v4875_v13, %v4874_v45  ;;  %v4847_v49 = vsel %vm4846_vm12, %v4845_v25, %v4844_v50 }
 0x23f   :  { %4877 = vrot.lane.b32.xlu0 %v4876_v38, %s5202_s4  ;;  %v4850_v54 = vsel %vm4849_vm13, %v4848_v27, %v4847_v49 }
 0x240   :  { %v4853_v52 = vsel %vm4852_vm14, %v4851_v19, %v4850_v54 }
 0x2a9   :  { %v4903_v43 = vpop.permute.xlu1 %4902 }
 0x2b1   :  { %v4878_v0 = vpop.permute.xlu0 %4877 }
 0x2b2   :  { %v4905_v7 = vsel %vm1611_vm5, %v4853_v52, %v4878_v0 }
 0x2b3   :  { %v4907_v36 = vsel %vm4906_vm15, %v4905_v7, %v4903_v43 }
 0x2b4   :  { %v4909_v35 = vsel %vm4908_vm0, %v4907_v36, 0.0 }
 0x2b5   :  { %4910 = vst [vmem:[#allocation2] sm:$0xff] %v4909_v35 }
 0x2b6   :  { %5182 = shalt.err (!%p5179_p4)
}
 0x2b7   :  { %4920 = dma.vmem_to_hbm [thread:$0]  %s4918_s30, 128, %s6793_s5, [#allocation3]  }
 0x2b8   :  { %5191 = dma.done.wait [#allocation3], 128  }
 0x2b9   :  { %5192 = vsyncadd [#allocation3], 4294967168 }
 0x2ba   :  { %4924 = vsyncpa [#allocation3], 1 }

</bundles_post_ra>
